<compile_context>
chip_gen: v7x
topology: tpu7x:2x2x1
jax: 0.10.0
libtpu: 0.0.40
codegen_flags: <defaults>
</compile_context>

<pallas_src>
import functools

import numpy as np
import jax
import jax.numpy as jnp
from jax.experimental import pallas as pl
from jax.experimental.pallas import tpu as pltpu


# ----------------------------- in-kernel helpers -----------------------------

def _ln(x, g, b, eps=1e-6):
    """LayerNorm over the last axis (matches nn.LayerNorm(eps=1e-6), biased var)."""
    mu = jnp.mean(x, axis=-1, keepdims=True)
    var = jnp.mean((x - mu) ** 2, axis=-1, keepdims=True)
    return (x - mu) * jax.lax.rsqrt(var + eps) * g + b


# ----------------------------- fused Pallas kernel ----------------------------

def encoder_fused_kernel(x_ref, bias_ref, ln0g_ref, ln0b_ref,
                         wq_ref, wk_ref, wv_ref, wfc_ref,
                         ln1g_ref, ln1b_ref, w1_ref, b1_ref, w2_ref, b2_ref,
                         ln2g_ref, ln2b_ref, o_ref):
    BL, D = x_ref.shape                 # B*L, d_model
    B, L, _ = bias_ref.shape            # additive attention bias (B, L, L)
    n_layers, n_head, _, d_k = wq_ref.shape
    d_v = wv_ref.shape[-1]

    bias = bias_ref[...]                                    # (B, L, L) f32
    # Initial LayerNorm (Encoder.layer_norm), fused into the same kernel.
    x = _ln(x_ref[...], ln0g_ref[...], ln0b_ref[...])       # (BL, D) f32

    for l in range(n_layers):                               # static unroll over layers
        xb = x.astype(jnp.bfloat16)

        # ---- multi-head self-attention ----
        attn = jnp.zeros((BL, D), jnp.float32)
        for h in range(n_head):                             # static unroll over heads
            # per-head projections: full-tile matmuls, no lane slicing of activations
            q = jnp.dot(xb, wq_ref[l, h], preferred_element_type=jnp.float32)  # (BL, d_k), scale folded into Wq
            k = jnp.dot(xb, wk_ref[l, h], preferred_element_type=jnp.float32)  # (BL, d_k)
            v = jnp.dot(xb, wv_ref[l, h], preferred_element_type=jnp.float32)  # (BL, d_v)

            q3 = q.reshape(B, L, d_k).astype(jnp.bfloat16)
            k3 = k.reshape(B, L, d_k).astype(jnp.bfloat16)
            v3 = v.reshape(B, L, d_v).astype(jnp.bfloat16)

            # batched scores over the batch dim, additive mask bias, softmax
            s = jnp.einsum('bld,bmd->blm', q3, k3,
                           preferred_element_type=jnp.float32) + bias          # (B, L, L)
            s = s - jnp.max(s, axis=-1, keepdims=True)
            p = jnp.exp(s)
            p = p * pl.reciprocal(jnp.sum(p, axis=-1, keepdims=True), approx=True)

            ctx = jnp.einsum('blm,bmd->bld', p.astype(jnp.bfloat16), v3,
                             preferred_element_type=jnp.float32)               # (B, L, d_v)

            # accumulate directly against this head's slice of W_fc (no concat)
            attn = attn + jnp.dot(ctx.reshape(BL, d_v).astype(jnp.bfloat16),
                                  wfc_ref[l, h], preferred_element_type=jnp.float32)

        y = _ln(attn + x, ln1g_ref[l], ln1b_ref[l])          # residual + LN (f32)

        # ---- position-wise feed-forward ----
        yb = y.astype(jnp.bfloat16)
        h1 = jnp.maximum(
            jnp.dot(yb, w1_ref[l], preferred_element_type=jnp.float32) + b1_ref[l], 0.0)
        ff = jnp.dot(h1.astype(jnp.bfloat16), w2_ref[l],
                     preferred_element_type=jnp.float32) + b2_ref[l]
        x = _ln(ff + y, ln2g_ref[l], ln2b_ref[l])            # residual + LN (f32)

    o_ref[...] = x


# ----------------------------- wrapper -----------------------------------------

def _full_spec(a):
    shp = a.shape
    nd = len(shp)
    return pl.BlockSpec(shp, lambda i, _nd=nd: (0,) * _nd)


def pallas_encoder(x2, bias, ln0g, ln0b, sp):
    BL, D = x2.shape
    args = (x2, bias, ln0g, ln0b,
            sp["wq"], sp["wk"], sp["wv"], sp["wfc"],
            sp["ln1g"], sp["ln1b"], sp["w1"], sp["b1"], sp["w2"], sp["b2"],
            sp["ln2g"], sp["ln2b"])
    return pl.pallas_call(
        encoder_fused_kernel,
        grid=(1,),
        in_specs=[_full_spec(a) for a in args],
        out_specs=pl.BlockSpec((BL, D), lambda i: (0, 0)),
        out_shape=jax.ShapeDtypeStruct((BL, D), jnp.float32),
        compiler_params=pltpu.CompilerParams(dimension_semantics=("arbitrary",)),
    )(*args)


# ----------------------------- weight preparation ------------------------------

def _split_heads_in(w, n_head):
    # (D, H*dh) -> (H, D, dh); column f = h*dh + d  <->  (h, d)
    D, Hd = w.shape
    return jnp.transpose(w.reshape(D, n_head, Hd // n_head), (1, 0, 2))


def _split_heads_out(w, n_head):
    # (H*dv, D) -> (H, dv, D); row f = h*dv + d  <->  (h, d)
    Hd, D = w.shape
    return w.reshape(n_head, Hd // n_head, D)


def stack_layer_params(params, *, n_head, d_k):
    """Stack per-layer weights along a leading layer axis; fold 1/sqrt(d_k) into Wq;
    cast matmul weights to bf16 (LN params / biases stay f32)."""
    ls = params["layers"]
    temp = float(d_k) ** 0.5
    return {
        "wq": jnp.stack([_split_heads_in(lp["wq"] / temp, n_head) for lp in ls]).astype(jnp.bfloat16),
        "wk": jnp.stack([_split_heads_in(lp["wk"], n_head) for lp in ls]).astype(jnp.bfloat16),
        "wv": jnp.stack([_split_heads_in(lp["wv"], n_head) for lp in ls]).astype(jnp.bfloat16),
        "wfc": jnp.stack([_split_heads_out(lp["wfc"], n_head) for lp in ls]).astype(jnp.bfloat16),
        "ln1g": jnp.stack([lp["ln1g"] for lp in ls]),
        "ln1b": jnp.stack([lp["ln1b"] for lp in ls]),
        "w1": jnp.stack([lp["w1"] for lp in ls]).astype(jnp.bfloat16),
        "b1": jnp.stack([lp["b1"] for lp in ls]),
        "w2": jnp.stack([lp["w2"] for lp in ls]).astype(jnp.bfloat16),
        "b2": jnp.stack([lp["b2"] for lp in ls]),
        "ln2g": jnp.stack([lp["ln2g"] for lp in ls]),
        "ln2b": jnp.stack([lp["ln2b"] for lp in ls]),
    }


# ----------------------------- model setup (glue) -----------------------------

def sinusoid_table(n_position, d_hid):
    pos = np.arange(n_position, dtype=np.float64)[:, None]
    hid = np.arange(d_hid)[None, :]
    angle = pos / np.power(10000.0, 2 * (hid // 2) / d_hid)
    table = angle.copy()
    table[:, 0::2] = np.sin(angle[:, 0::2])
    table[:, 1::2] = np.cos(angle[:, 1::2])
    return jnp.asarray(table, dtype=jnp.float32)          # (n_position, d_hid)


def init_params(key, *, n_src_vocab, d_model, n_layers, n_head, d_k, d_inner):
    d_v = d_k
    keys = jax.random.split(key, 1 + 7 * n_layers)
    scale = 0.02
    params = {
        "emb": scale * jax.random.normal(keys[0], (n_src_vocab, d_model), jnp.float32),
        "ln0g": jnp.ones((1, d_model), jnp.float32),
        "ln0b": jnp.zeros((1, d_model), jnp.float32),
        "layers": [],
    }
    ki = 1
    for _ in range(n_layers):
        lp = {
            "wq": scale * jax.random.normal(keys[ki + 0], (d_model, n_head * d_k), jnp.float32),
            "wk": scale * jax.random.normal(keys[ki + 1], (d_model, n_head * d_k), jnp.float32),
            "wv": scale * jax.random.normal(keys[ki + 2], (d_model, n_head * d_v), jnp.float32),
            "wfc": scale * jax.random.normal(keys[ki + 3], (n_head * d_v, d_model), jnp.float32),
            "ln1g": jnp.ones((1, d_model), jnp.float32),
            "ln1b": jnp.zeros((1, d_model), jnp.float32),
            "w1": scale * jax.random.normal(keys[ki + 4], (d_model, d_inner), jnp.float32),
            "b1": jnp.zeros((1, d_inner), jnp.float32),
            "w2": scale * jax.random.normal(keys[ki + 5], (d_inner, d_model), jnp.float32),
            "b2": jnp.zeros((1, d_model), jnp.float32),
            "ln2g": jnp.ones((1, d_model), jnp.float32),
            "ln2b": jnp.zeros((1, d_model), jnp.float32),
        }
        ki += 7
        params["layers"].append(lp)
    return params


def encoder_forward(params, src_seq, src_mask, pos_table, *, n_head, d_k):
    B, L = src_seq.shape
    D = params["emb"].shape[1]

    # Embedding lookup + positional encoding (+ dropout = identity)  [plain-JAX glue]
    x = params["emb"][src_seq] + pos_table[:L][None, :, :]        # (B, L, D) f32

    # Additive mask bias: -1e9 where mask == 1 (matches masked_fill(mask == 1, -1e9))
    bias = jnp.where(src_mask == 1, -1e9, 0.0).astype(jnp.float32)  # (B, L, L)

    stacked = stack_layer_params(params, n_head=n_head, d_k=d_k)

    out = pallas_encoder(x.reshape(B * L, D), bias,
                         params["ln0g"], params["ln0b"], stacked)
    return out.reshape(B, L, D)


# ----------------------------- main -------------------------------------------

if __name__ == "__main__":
    # Small config consistent with Encoder.__init__
    n_src_vocab = 50
    d_word_vec = 32      # d_model
    n_layers = 2
    n_head = 2
    d_k = 16
    d_inner = 64
    n_position = 200
    B, L = 2, 8

    key = jax.random.PRNGKey(0)
    k_param, k_seq, k_mask = jax.random.split(key, 3)

    params = init_params(k_param, n_src_vocab=n_src_vocab, d_model=d_word_vec,
                         n_layers=n_layers, n_head=n_head, d_k=d_k, d_inner=d_inner)
    pos_table = sinusoid_table(n_position, d_word_vec)

    src_seq = jax.random.randint(k_seq, (B, L), 0, n_src_vocab, dtype=jnp.int32)
    # mask == 1.0 means "masked" (filled with -1e9 before softmax)
    src_mask = jax.random.bernoulli(k_mask, 0.1, (B, L, L)).astype(jnp.float32)

    fwd = jax.jit(functools.partial(encoder_forward, n_head=n_head, d_k=d_k))
    out = fwd(params, src_seq, src_mask, pos_table)
    jax.block_until_ready(out)
    assert out.shape == (B, L, d_word_vec)
    print("KERNEL_OK")
</pallas_src>

<mosaic_0001>
module attributes {stable_mosaic.version = 11 : i64} {
  func.func @encoder_fused_kernel(%arg0: i32, %arg1: memref<16x32xf32, #tpu.memory_space<vmem>>, %arg2: memref<2x8x8xf32, #tpu.memory_space<vmem>>, %arg3: memref<1x32xf32, #tpu.memory_space<vmem>>, %arg4: memref<1x32xf32, #tpu.memory_space<vmem>>, %arg5: memref<2x2x32x16xbf16, #tpu.memory_space<vmem>>, %arg6: memref<2x2x32x16xbf16, #tpu.memory_space<vmem>>, %arg7: memref<2x2x32x16xbf16, #tpu.memory_space<vmem>>, %arg8: memref<2x2x16x32xbf16, #tpu.memory_space<vmem>>, %arg9: memref<2x1x32xf32, #tpu.memory_space<vmem>>, %arg10: memref<2x1x32xf32, #tpu.memory_space<vmem>>, %arg11: memref<2x32x64xbf16, #tpu.memory_space<vmem>>, %arg12: memref<2x1x64xf32, #tpu.memory_space<vmem>>, %arg13: memref<2x64x32xbf16, #tpu.memory_space<vmem>>, %arg14: memref<2x1x32xf32, #tpu.memory_space<vmem>>, %arg15: memref<2x1x32xf32, #tpu.memory_space<vmem>>, %arg16: memref<2x1x32xf32, #tpu.memory_space<vmem>>, %arg17: memref<16x32xf32, #tpu.memory_space<vmem>>) attributes {dimension_semantics = [#tpu.dimension_semantics<arbitrary>], iteration_bounds = array<i64: 1>, scalar_prefetch = 0 : i64, scratch_operands = 0 : i64, tpu.core_type = #tpu.core_type<tc>, window_params = [{pipeline_mode = #tpu.pipeline_mode<synchronous>, transform_indices = @transform_0, window_bounds = array<i64: 16, 32>}, {pipeline_mode = #tpu.pipeline_mode<synchronous>, transform_indices = @transform_1, window_bounds = array<i64: 2, 8, 8>}, {pipeline_mode = #tpu.pipeline_mode<synchronous>, transform_indices = @transform_2, window_bounds = array<i64: 1, 32>}, {pipeline_mode = #tpu.pipeline_mode<synchronous>, transform_indices = @transform_3, window_bounds = array<i64: 1, 32>}, {pipeline_mode = #tpu.pipeline_mode<synchronous>, transform_indices = @transform_4, window_bounds = array<i64: 2, 2, 32, 16>}, {pipeline_mode = #tpu.pipeline_mode<synchronous>, transform_indices = @transform_5, window_bounds = array<i64: 2, 2, 32, 16>}, {pipeline_mode = #tpu.pipeline_mode<synchronous>, transform_indices = @transform_6, window_bounds = array<i64: 2, 2, 32, 16>}, {pipeline_mode = #tpu.pipeline_mode<synchronous>, transform_indices = @transform_7, window_bounds = array<i64: 2, 2, 16, 32>}, {pipeline_mode = #tpu.pipeline_mode<synchronous>, transform_indices = @transform_8, window_bounds = array<i64: 2, 1, 32>}, {pipeline_mode = #tpu.pipeline_mode<synchronous>, transform_indices = @transform_9, window_bounds = array<i64: 2, 1, 32>}, {pipeline_mode = #tpu.pipeline_mode<synchronous>, transform_indices = @transform_10, window_bounds = array<i64: 2, 32, 64>}, {pipeline_mode = #tpu.pipeline_mode<synchronous>, transform_indices = @transform_11, window_bounds = array<i64: 2, 1, 64>}, {pipeline_mode = #tpu.pipeline_mode<synchronous>, transform_indices = @transform_12, window_bounds = array<i64: 2, 64, 32>}, {pipeline_mode = #tpu.pipeline_mode<synchronous>, transform_indices = @transform_13, window_bounds = array<i64: 2, 1, 32>}, {pipeline_mode = #tpu.pipeline_mode<synchronous>, transform_indices = @transform_14, window_bounds = array<i64: 2, 1, 32>}, {pipeline_mode = #tpu.pipeline_mode<synchronous>, transform_indices = @transform_15, window_bounds = array<i64: 2, 1, 32>}, {pipeline_mode = #tpu.pipeline_mode<synchronous>, transform_indices = @transform_16, window_bounds = array<i64: 16, 32>}]} {
    %c0 = arith.constant 0 : index
    %c0_0 = arith.constant 0 : index
    %c0_1 = arith.constant 0 : index
    %0 = vector.load %arg2[%c0, %c0_0, %c0_1] : memref<2x8x8xf32, #tpu.memory_space<vmem>>, vector<2x8x8xf32>
    %c0_2 = arith.constant 0 : index
    %c0_3 = arith.constant 0 : index
    %1 = vector.load %arg1[%c0_2, %c0_3] : memref<16x32xf32, #tpu.memory_space<vmem>>, vector<16x32xf32>
    %c0_4 = arith.constant 0 : index
    %c0_5 = arith.constant 0 : index
    %2 = vector.load %arg3[%c0_4, %c0_5] : memref<1x32xf32, #tpu.memory_space<vmem>>, vector<1x32xf32>
    %c0_6 = arith.constant 0 : index
    %c0_7 = arith.constant 0 : index
    %3 = vector.load %arg4[%c0_6, %c0_7] : memref<1x32xf32, #tpu.memory_space<vmem>>, vector<1x32xf32>
    %cst = arith.constant dense<0.000000e+00> : vector<16xf32>
    %4 = vector.multi_reduction <add>, %1, %cst [1] : vector<16x32xf32> to vector<16xf32>
    %5 = vector.shape_cast %4 : vector<16xf32> to vector<16x1xf32>
    %cst_8 = arith.constant 3.200000e+01 : f32
    %6 = vector.broadcast %cst_8 : f32 to vector<16x1xf32>
    %7 = arith.divf %5, %6 : vector<16x1xf32>
    %8 = vector.broadcast %7 : vector<16x1xf32> to vector<16x32xf32>
    %9 = arith.subf %1, %8 : vector<16x32xf32>
    %10 = arith.mulf %9, %9 : vector<16x32xf32>
    %cst_9 = arith.constant dense<0.000000e+00> : vector<16xf32>
    %11 = vector.multi_reduction <add>, %10, %cst_9 [1] : vector<16x32xf32> to vector<16xf32>
    %12 = vector.shape_cast %11 : vector<16xf32> to vector<16x1xf32>
    %cst_10 = arith.constant 3.200000e+01 : f32
    %13 = vector.broadcast %cst_10 : f32 to vector<16x1xf32>
    %14 = arith.divf %12, %13 : vector<16x1xf32>
    %15 = vector.broadcast %7 : vector<16x1xf32> to vector<16x32xf32>
    %16 = arith.subf %1, %15 : vector<16x32xf32>
    %cst_11 = arith.constant 9.99999997E-7 : f32
    %17 = vector.broadcast %cst_11 : f32 to vector<16x1xf32>
    %18 = arith.addf %14, %17 : vector<16x1xf32>
    %19 = math.rsqrt %18 : vector<16x1xf32>
    %20 = vector.broadcast %19 : vector<16x1xf32> to vector<16x32xf32>
    %21 = arith.mulf %16, %20 : vector<16x32xf32>
    %22 = vector.broadcast %2 : vector<1x32xf32> to vector<16x32xf32>
    %23 = arith.mulf %21, %22 : vector<16x32xf32>
    %24 = vector.broadcast %3 : vector<1x32xf32> to vector<16x32xf32>
    %25 = arith.addf %23, %24 : vector<16x32xf32>
    %26 = arith.truncf %25 : vector<16x32xf32> to vector<16x32xbf16>
    %cst_12 = arith.constant 0.000000e+00 : f32
    %27 = vector.broadcast %cst_12 : f32 to vector<16x32xf32>
    %c0_13 = arith.constant 0 : index
    %c0_14 = arith.constant 0 : index
    %c0_15 = arith.constant 0 : index
    %c0_16 = arith.constant 0 : index
    %28 = vector.load %arg5[%c0_13, %c0_14, %c0_15, %c0_16] : memref<2x2x32x16xbf16, #tpu.memory_space<vmem>>, vector<1x1x32x16xbf16>
    %29 = vector.shape_cast %28 : vector<1x1x32x16xbf16> to vector<32x16xbf16>
    %cst_17 = arith.constant dense<0.000000e+00> : vector<16x16xf32>
    %30 = tpu.matmul %26, %29, %cst_17 {dimension_numbers = #tpu.dot_dimension_numbers<[1], [0], [0], [1], [0, 0, 1, 1], [], []>} : vector<16x32xbf16>, vector<32x16xbf16>, vector<16x16xf32> -> vector<16x16xf32>
    %c0_18 = arith.constant 0 : index
    %c0_19 = arith.constant 0 : index
    %c0_20 = arith.constant 0 : index
    %c0_21 = arith.constant 0 : index
    %31 = vector.load %arg6[%c0_18, %c0_19, %c0_20, %c0_21] : memref<2x2x32x16xbf16, #tpu.memory_space<vmem>>, vector<1x1x32x16xbf16>
    %32 = vector.shape_cast %31 : vector<1x1x32x16xbf16> to vector<32x16xbf16>
    %cst_22 = arith.constant dense<0.000000e+00> : vector<16x16xf32>
    %33 = tpu.matmul %26, %32, %cst_22 {dimension_numbers = #tpu.dot_dimension_numbers<[1], [0], [0], [1], [0, 0, 1, 1], [], []>} : vector<16x32xbf16>, vector<32x16xbf16>, vector<16x16xf32> -> vector<16x16xf32>
    %c0_23 = arith.constant 0 : index
    %c0_24 = arith.constant 0 : index
    %c0_25 = arith.constant 0 : index
    %c0_26 = arith.constant 0 : index
    %34 = vector.load %arg7[%c0_23, %c0_24, %c0_25, %c0_26] : memref<2x2x32x16xbf16, #tpu.memory_space<vmem>>, vector<1x1x32x16xbf16>
    %35 = vector.shape_cast %34 : vector<1x1x32x16xbf16> to vector<32x16xbf16>
    %cst_27 = arith.constant dense<0.000000e+00> : vector<16x16xf32>
    %36 = tpu.matmul %26, %35, %cst_27 {dimension_numbers = #tpu.dot_dimension_numbers<[1], [0], [0], [1], [0, 0, 1, 1], [], []>} : vector<16x32xbf16>, vector<32x16xbf16>, vector<16x16xf32> -> vector<16x16xf32>
    %37 = vector.shape_cast %30 : vector<16x16xf32> to vector<2x8x16xf32>
    %38 = arith.truncf %37 : vector<2x8x16xf32> to vector<2x8x16xbf16>
    %39 = vector.shape_cast %33 : vector<16x16xf32> to vector<2x8x16xf32>
    %40 = arith.truncf %39 : vector<2x8x16xf32> to vector<2x8x16xbf16>
    %41 = vector.shape_cast %36 : vector<16x16xf32> to vector<2x8x16xf32>
    %42 = arith.truncf %41 : vector<2x8x16xf32> to vector<2x8x16xbf16>
    "tpu.trace_start"() <{level = 10 : i32, message = "bld,bmd->blm"}> : () -> ()
    %cst_28 = arith.constant dense<0.000000e+00> : vector<2x8x8xf32>
    %43 = tpu.matmul %38, %40, %cst_28 {dimension_numbers = #tpu.dot_dimension_numbers<[2], [2], [1], [1], [0, 0, 0, 1, 1, 1], [0], [0]>} : vector<2x8x16xbf16>, vector<2x8x16xbf16>, vector<2x8x8xf32> -> vector<2x8x8xf32>
    "tpu.trace_stop"() : () -> ()
    %44 = arith.addf %43, %0 : vector<2x8x8xf32>
    %cst_29 = arith.constant dense<0xFF800000> : vector<2x8xf32>
    %45 = vector.multi_reduction <maximumf>, %44, %cst_29 [2] : vector<2x8x8xf32> to vector<2x8xf32>
    %46 = vector.shape_cast %45 : vector<2x8xf32> to vector<2x8x1xf32>
    %47 = vector.broadcast %46 : vector<2x8x1xf32> to vector<2x8x8xf32>
    %48 = arith.subf %44, %47 : vector<2x8x8xf32>
    %49 = math.exp %48 : vector<2x8x8xf32>
    %cst_30 = arith.constant dense<0.000000e+00> : vector<2x8xf32>
    %50 = vector.multi_reduction <add>, %49, %cst_30 [2] : vector<2x8x8xf32> to vector<2x8xf32>
    %51 = vector.shape_cast %50 : vector<2x8xf32> to vector<2x8x1xf32>
    %52 = tpu.reciprocal %51 {approx = true} : vector<2x8x1xf32> -> vector<2x8x1xf32>
    %53 = vector.broadcast %52 : vector<2x8x1xf32> to vector<2x8x8xf32>
    %54 = arith.mulf %49, %53 : vector<2x8x8xf32>
    %55 = arith.truncf %54 : vector<2x8x8xf32> to vector<2x8x8xbf16>
    "tpu.trace_start"() <{level = 10 : i32, message = "blm,bmd->bld"}> : () -> ()
    %cst_31 = arith.constant dense<0.000000e+00> : vector<2x8x16xf32>
    %56 = tpu.matmul %55, %42, %cst_31 {dimension_numbers = #tpu.dot_dimension_numbers<[2], [1], [1], [2], [0, 0, 0, 1, 1, 2], [0], [0]>} : vector<2x8x8xbf16>, vector<2x8x16xbf16>, vector<2x8x16xf32> -> vector<2x8x16xf32>
    "tpu.trace_stop"() : () -> ()
    %57 = vector.shape_cast %56 : vector<2x8x16xf32> to vector<16x16xf32>
    %58 = arith.truncf %57 : vector<16x16xf32> to vector<16x16xbf16>
    %c0_32 = arith.constant 0 : index
    %c0_33 = arith.constant 0 : index
    %c0_34 = arith.constant 0 : index
    %c0_35 = arith.constant 0 : index
    %59 = vector.load %arg8[%c0_32, %c0_33, %c0_34, %c0_35] : memref<2x2x16x32xbf16, #tpu.memory_space<vmem>>, vector<1x1x16x32xbf16>
    %60 = vector.shape_cast %59 : vector<1x1x16x32xbf16> to vector<16x32xbf16>
    %cst_36 = arith.constant dense<0.000000e+00> : vector<16x32xf32>
    %61 = tpu.matmul %58, %60, %cst_36 {dimension_numbers = #tpu.dot_dimension_numbers<[1], [0], [0], [1], [0, 0, 1, 1], [], []>} : vector<16x16xbf16>, vector<16x32xbf16>, vector<16x32xf32> -> vector<16x32xf32>
    %62 = arith.addf %27, %61 : vector<16x32xf32>
    %c0_37 = arith.constant 0 : index
    %c1 = arith.constant 1 : index
    %c0_38 = arith.constant 0 : index
    %c0_39 = arith.constant 0 : index
    %63 = vector.load %arg5[%c0_37, %c1, %c0_38, %c0_39] : memref<2x2x32x16xbf16, #tpu.memory_space<vmem>>, vector<1x1x32x16xbf16>
    %64 = vector.shape_cast %63 : vector<1x1x32x16xbf16> to vector<32x16xbf16>
    %cst_40 = arith.constant dense<0.000000e+00> : vector<16x16xf32>
    %65 = tpu.matmul %26, %64, %cst_40 {dimension_numbers = #tpu.dot_dimension_numbers<[1], [0], [0], [1], [0, 0, 1, 1], [], []>} : vector<16x32xbf16>, vector<32x16xbf16>, vector<16x16xf32> -> vector<16x16xf32>
    %c0_41 = arith.constant 0 : index
    %c1_42 = arith.constant 1 : index
    %c0_43 = arith.constant 0 : index
    %c0_44 = arith.constant 0 : index
    %66 = vector.load %arg6[%c0_41, %c1_42, %c0_43, %c0_44] : memref<2x2x32x16xbf16, #tpu.memory_space<vmem>>, vector<1x1x32x16xbf16>
    %67 = vector.shape_cast %66 : vector<1x1x32x16xbf16> to vector<32x16xbf16>
    %cst_45 = arith.constant dense<0.000000e+00> : vector<16x16xf32>
    %68 = tpu.matmul %26, %67, %cst_45 {dimension_numbers = #tpu.dot_dimension_numbers<[1], [0], [0], [1], [0, 0, 1, 1], [], []>} : vector<16x32xbf16>, vector<32x16xbf16>, vector<16x16xf32> -> vector<16x16xf32>
    %c0_46 = arith.constant 0 : index
    %c1_47 = arith.constant 1 : index
    %c0_48 = arith.constant 0 : index
    %c0_49 = arith.constant 0 : index
    %69 = vector.load %arg7[%c0_46, %c1_47, %c0_48, %c0_49] : memref<2x2x32x16xbf16, #tpu.memory_space<vmem>>, vector<1x1x32x16xbf16>
    %70 = vector.shape_cast %69 : vector<1x1x32x16xbf16> to vector<32x16xbf16>
    %cst_50 = arith.constant dense<0.000000e+00> : vector<16x16xf32>
    %71 = tpu.matmul %26, %70, %cst_50 {dimension_numbers = #tpu.dot_dimension_numbers<[1], [0], [0], [1], [0, 0, 1, 1], [], []>} : vector<16x32xbf16>, vector<32x16xbf16>, vector<16x16xf32> -> vector<16x16xf32>
    %72 = vector.shape_cast %65 : vector<16x16xf32> to vector<2x8x16xf32>
    %73 = arith.truncf %72 : vector<2x8x16xf32> to vector<2x8x16xbf16>
    %74 = vector.shape_cast %68 : vector<16x16xf32> to vector<2x8x16xf32>
    %75 = arith.truncf %74 : vector<2x8x16xf32> to vector<2x8x16xbf16>
    %76 = vector.shape_cast %71 : vector<16x16xf32> to vector<2x8x16xf32>
    %77 = arith.truncf %76 : vector<2x8x16xf32> to vector<2x8x16xbf16>
    "tpu.trace_start"() <{level = 10 : i32, message = "bld,bmd->blm"}> : () -> ()
    %cst_51 = arith.constant dense<0.000000e+00> : vector<2x8x8xf32>
    %78 = tpu.matmul %73, %75, %cst_51 {dimension_numbers = #tpu.dot_dimension_numbers<[2], [2], [1], [1], [0, 0, 0, 1, 1, 1], [0], [0]>} : vector<2x8x16xbf16>, vector<2x8x16xbf16>, vector<2x8x8xf32> -> vector<2x8x8xf32>
    "tpu.trace_stop"() : () -> ()
    %79 = arith.addf %78, %0 : vector<2x8x8xf32>
    %cst_52 = arith.constant dense<0xFF800000> : vector<2x8xf32>
    %80 = vector.multi_reduction <maximumf>, %79, %cst_52 [2] : vector<2x8x8xf32> to vector<2x8xf32>
    %81 = vector.shape_cast %80 : vector<2x8xf32> to vector<2x8x1xf32>
    %82 = vector.broadcast %81 : vector<2x8x1xf32> to vector<2x8x8xf32>
    %83 = arith.subf %79, %82 : vector<2x8x8xf32>
    %84 = math.exp %83 : vector<2x8x8xf32>
    %cst_53 = arith.constant dense<0.000000e+00> : vector<2x8xf32>
    %85 = vector.multi_reduction <add>, %84, %cst_53 [2] : vector<2x8x8xf32> to vector<2x8xf32>
    %86 = vector.shape_cast %85 : vector<2x8xf32> to vector<2x8x1xf32>
    %87 = tpu.reciprocal %86 {approx = true} : vector<2x8x1xf32> -> vector<2x8x1xf32>
    %88 = vector.broadcast %87 : vector<2x8x1xf32> to vector<2x8x8xf32>
    %89 = arith.mulf %84, %88 : vector<2x8x8xf32>
    %90 = arith.truncf %89 : vector<2x8x8xf32> to vector<2x8x8xbf16>
    "tpu.trace_start"() <{level = 10 : i32, message = "blm,bmd->bld"}> : () -> ()
    %cst_54 = arith.constant dense<0.000000e+00> : vector<2x8x16xf32>
    %91 = tpu.matmul %90, %77, %cst_54 {dimension_numbers = #tpu.dot_dimension_numbers<[2], [1], [1], [2], [0, 0, 0, 1, 1, 2], [0], [0]>} : vector<2x8x8xbf16>, vector<2x8x16xbf16>, vector<2x8x16xf32> -> vector<2x8x16xf32>
    "tpu.trace_stop"() : () -> ()
    %92 = vector.shape_cast %91 : vector<2x8x16xf32> to vector<16x16xf32>
    %93 = arith.truncf %92 : vector<16x16xf32> to vector<16x16xbf16>
    %c0_55 = arith.constant 0 : index
    %c1_56 = arith.constant 1 : index
    %c0_57 = arith.constant 0 : index
    %c0_58 = arith.constant 0 : index
    %94 = vector.load %arg8[%c0_55, %c1_56, %c0_57, %c0_58] : memref<2x2x16x32xbf16, #tpu.memory_space<vmem>>, vector<1x1x16x32xbf16>
    %95 = vector.shape_cast %94 : vector<1x1x16x32xbf16> to vector<16x32xbf16>
    %cst_59 = arith.constant dense<0.000000e+00> : vector<16x32xf32>
    %96 = tpu.matmul %93, %95, %cst_59 {dimension_numbers = #tpu.dot_dimension_numbers<[1], [0], [0], [1], [0, 0, 1, 1], [], []>} : vector<16x16xbf16>, vector<16x32xbf16>, vector<16x32xf32> -> vector<16x32xf32>
    %97 = arith.addf %62, %96 : vector<16x32xf32>
    %98 = arith.addf %97, %25 : vector<16x32xf32>
    %c0_60 = arith.constant 0 : index
    %c0_61 = arith.constant 0 : index
    %c0_62 = arith.constant 0 : index
    %99 = vector.load %arg9[%c0_60, %c0_61, %c0_62] : memref<2x1x32xf32, #tpu.memory_space<vmem>>, vector<1x1x32xf32>
    %100 = vector.shape_cast %99 : vector<1x1x32xf32> to vector<1x32xf32>
    %c0_63 = arith.constant 0 : index
    %c0_64 = arith.constant 0 : index
    %c0_65 = arith.constant 0 : index
    %101 = vector.load %arg10[%c0_63, %c0_64, %c0_65] : memref<2x1x32xf32, #tpu.memory_space<vmem>>, vector<1x1x32xf32>
    %102 = vector.shape_cast %101 : vector<1x1x32xf32> to vector<1x32xf32>
    %cst_66 = arith.constant dense<0.000000e+00> : vector<16xf32>
    %103 = vector.multi_reduction <add>, %98, %cst_66 [1] : vector<16x32xf32> to vector<16xf32>
    %104 = vector.shape_cast %103 : vector<16xf32> to vector<16x1xf32>
    %cst_67 = arith.constant 3.200000e+01 : f32
    %105 = vector.broadcast %cst_67 : f32 to vector<16x1xf32>
    %106 = arith.divf %104, %105 : vector<16x1xf32>
    %107 = vector.broadcast %106 : vector<16x1xf32> to vector<16x32xf32>
    %108 = arith.subf %98, %107 : vector<16x32xf32>
    %109 = arith.mulf %108, %108 : vector<16x32xf32>
    %cst_68 = arith.constant dense<0.000000e+00> : vector<16xf32>
    %110 = vector.multi_reduction <add>, %109, %cst_68 [1] : vector<16x32xf32> to vector<16xf32>
    %111 = vector.shape_cast %110 : vector<16xf32> to vector<16x1xf32>
    %cst_69 = arith.constant 3.200000e+01 : f32
    %112 = vector.broadcast %cst_69 : f32 to vector<16x1xf32>
    %113 = arith.divf %111, %112 : vector<16x1xf32>
    %114 = vector.broadcast %106 : vector<16x1xf32> to vector<16x32xf32>
    %115 = arith.subf %98, %114 : vector<16x32xf32>
    %cst_70 = arith.constant 9.99999997E-7 : f32
    %116 = vector.broadcast %cst_70 : f32 to vector<16x1xf32>
    %117 = arith.addf %113, %116 : vector<16x1xf32>
    %118 = math.rsqrt %117 : vector<16x1xf32>
    %119 = vector.broadcast %118 : vector<16x1xf32> to vector<16x32xf32>
    %120 = arith.mulf %115, %119 : vector<16x32xf32>
    %121 = vector.broadcast %100 : vector<1x32xf32> to vector<16x32xf32>
    %122 = arith.mulf %120, %121 : vector<16x32xf32>
    %123 = vector.broadcast %102 : vector<1x32xf32> to vector<16x32xf32>
    %124 = arith.addf %122, %123 : vector<16x32xf32>
    %125 = arith.truncf %124 : vector<16x32xf32> to vector<16x32xbf16>
    %c0_71 = arith.constant 0 : index
    %c0_72 = arith.constant 0 : index
    %c0_73 = arith.constant 0 : index
    %126 = vector.load %arg11[%c0_71, %c0_72, %c0_73] : memref<2x32x64xbf16, #tpu.memory_space<vmem>>, vector<1x32x64xbf16>
    %127 = vector.shape_cast %126 : vector<1x32x64xbf16> to vector<32x64xbf16>
    %cst_74 = arith.constant dense<0.000000e+00> : vector<16x64xf32>
    %128 = tpu.matmul %125, %127, %cst_74 {dimension_numbers = #tpu.dot_dimension_numbers<[1], [0], [0], [1], [0, 0, 1, 1], [], []>} : vector<16x32xbf16>, vector<32x64xbf16>, vector<16x64xf32> -> vector<16x64xf32>
    %c0_75 = arith.constant 0 : index
    %c0_76 = arith.constant 0 : index
    %c0_77 = arith.constant 0 : index
    %129 = vector.load %arg12[%c0_75, %c0_76, %c0_77] : memref<2x1x64xf32, #tpu.memory_space<vmem>>, vector<1x1x64xf32>
    %130 = vector.shape_cast %129 : vector<1x1x64xf32> to vector<1x64xf32>
    %131 = vector.broadcast %130 : vector<1x64xf32> to vector<16x64xf32>
    %132 = arith.addf %128, %131 : vector<16x64xf32>
    %cst_78 = arith.constant 0.000000e+00 : f32
    %133 = vector.broadcast %cst_78 : f32 to vector<16x64xf32>
    %134 = arith.maximumf %132, %133 : vector<16x64xf32>
    %135 = arith.truncf %134 : vector<16x64xf32> to vector<16x64xbf16>
    %c0_79 = arith.constant 0 : index
    %c0_80 = arith.constant 0 : index
    %c0_81 = arith.constant 0 : index
    %136 = vector.load %arg13[%c0_79, %c0_80, %c0_81] : memref<2x64x32xbf16, #tpu.memory_space<vmem>>, vector<1x64x32xbf16>
    %137 = vector.shape_cast %136 : vector<1x64x32xbf16> to vector<64x32xbf16>
    %cst_82 = arith.constant dense<0.000000e+00> : vector<16x32xf32>
    %138 = tpu.matmul %135, %137, %cst_82 {dimension_numbers = #tpu.dot_dimension_numbers<[1], [0], [0], [1], [0, 0, 1, 1], [], []>} : vector<16x64xbf16>, vector<64x32xbf16>, vector<16x32xf32> -> vector<16x32xf32>
    %c0_83 = arith.constant 0 : index
    %c0_84 = arith.constant 0 : index
    %c0_85 = arith.constant 0 : index
    %139 = vector.load %arg14[%c0_83, %c0_84, %c0_85] : memref<2x1x32xf32, #tpu.memory_space<vmem>>, vector<1x1x32xf32>
    %140 = vector.shape_cast %139 : vector<1x1x32xf32> to vector<1x32xf32>
    %141 = vector.broadcast %140 : vector<1x32xf32> to vector<16x32xf32>
    %142 = arith.addf %138, %141 : vector<16x32xf32>
    %143 = arith.addf %142, %124 : vector<16x32xf32>
    %c0_86 = arith.constant 0 : index
    %c0_87 = arith.constant 0 : index
    %c0_88 = arith.constant 0 : index
    %144 = vector.load %arg15[%c0_86, %c0_87, %c0_88] : memref<2x1x32xf32, #tpu.memory_space<vmem>>, vector<1x1x32xf32>
    %145 = vector.shape_cast %144 : vector<1x1x32xf32> to vector<1x32xf32>
    %c0_89 = arith.constant 0 : index
    %c0_90 = arith.constant 0 : index
    %c0_91 = arith.constant 0 : index
    %146 = vector.load %arg16[%c0_89, %c0_90, %c0_91] : memref<2x1x32xf32, #tpu.memory_space<vmem>>, vector<1x1x32xf32>
    %147 = vector.shape_cast %146 : vector<1x1x32xf32> to vector<1x32xf32>
    %cst_92 = arith.constant dense<0.000000e+00> : vector<16xf32>
    %148 = vector.multi_reduction <add>, %143, %cst_92 [1] : vector<16x32xf32> to vector<16xf32>
    %149 = vector.shape_cast %148 : vector<16xf32> to vector<16x1xf32>
    %cst_93 = arith.constant 3.200000e+01 : f32
    %150 = vector.broadcast %cst_93 : f32 to vector<16x1xf32>
    %151 = arith.divf %149, %150 : vector<16x1xf32>
    %152 = vector.broadcast %151 : vector<16x1xf32> to vector<16x32xf32>
    %153 = arith.subf %143, %152 : vector<16x32xf32>
    %154 = arith.mulf %153, %153 : vector<16x32xf32>
    %cst_94 = arith.constant dense<0.000000e+00> : vector<16xf32>
    %155 = vector.multi_reduction <add>, %154, %cst_94 [1] : vector<16x32xf32> to vector<16xf32>
    %156 = vector.shape_cast %155 : vector<16xf32> to vector<16x1xf32>
    %cst_95 = arith.constant 3.200000e+01 : f32
    %157 = vector.broadcast %cst_95 : f32 to vector<16x1xf32>
    %158 = arith.divf %156, %157 : vector<16x1xf32>
    %159 = vector.broadcast %151 : vector<16x1xf32> to vector<16x32xf32>
    %160 = arith.subf %143, %159 : vector<16x32xf32>
    %cst_96 = arith.constant 9.99999997E-7 : f32
    %161 = vector.broadcast %cst_96 : f32 to vector<16x1xf32>
    %162 = arith.addf %158, %161 : vector<16x1xf32>
    %163 = math.rsqrt %162 : vector<16x1xf32>
    %164 = vector.broadcast %163 : vector<16x1xf32> to vector<16x32xf32>
    %165 = arith.mulf %160, %164 : vector<16x32xf32>
    %166 = vector.broadcast %145 : vector<1x32xf32> to vector<16x32xf32>
    %167 = arith.mulf %165, %166 : vector<16x32xf32>
    %168 = vector.broadcast %147 : vector<1x32xf32> to vector<16x32xf32>
    %169 = arith.addf %167, %168 : vector<16x32xf32>
    %170 = arith.truncf %169 : vector<16x32xf32> to vector<16x32xbf16>
    %cst_97 = arith.constant 0.000000e+00 : f32
    %171 = vector.broadcast %cst_97 : f32 to vector<16x32xf32>
    %c1_98 = arith.constant 1 : index
    %c0_99 = arith.constant 0 : index
    %c0_100 = arith.constant 0 : index
    %c0_101 = arith.constant 0 : index
    %172 = vector.load %arg5[%c1_98, %c0_99, %c0_100, %c0_101] : memref<2x2x32x16xbf16, #tpu.memory_space<vmem>>, vector<1x1x32x16xbf16>
    %173 = vector.shape_cast %172 : vector<1x1x32x16xbf16> to vector<32x16xbf16>
    %cst_102 = arith.constant dense<0.000000e+00> : vector<16x16xf32>
    %174 = tpu.matmul %170, %173, %cst_102 {dimension_numbers = #tpu.dot_dimension_numbers<[1], [0], [0], [1], [0, 0, 1, 1], [], []>} : vector<16x32xbf16>, vector<32x16xbf16>, vector<16x16xf32> -> vector<16x16xf32>
    %c1_103 = arith.constant 1 : index
    %c0_104 = arith.constant 0 : index
    %c0_105 = arith.constant 0 : index
    %c0_106 = arith.constant 0 : index
    %175 = vector.load %arg6[%c1_103, %c0_104, %c0_105, %c0_106] : memref<2x2x32x16xbf16, #tpu.memory_space<vmem>>, vector<1x1x32x16xbf16>
    %176 = vector.shape_cast %175 : vector<1x1x32x16xbf16> to vector<32x16xbf16>
    %cst_107 = arith.constant dense<0.000000e+00> : vector<16x16xf32>
    %177 = tpu.matmul %170, %176, %cst_107 {dimension_numbers = #tpu.dot_dimension_numbers<[1], [0], [0], [1], [0, 0, 1, 1], [], []>} : vector<16x32xbf16>, vector<32x16xbf16>, vector<16x16xf32> -> vector<16x16xf32>
    %c1_108 = arith.constant 1 : index
    %c0_109 = arith.constant 0 : index
    %c0_110 = arith.constant 0 : index
    %c0_111 = arith.constant 0 : index
    %178 = vector.load %arg7[%c1_108, %c0_109, %c0_110, %c0_111] : memref<2x2x32x16xbf16, #tpu.memory_space<vmem>>, vector<1x1x32x16xbf16>
    %179 = vector.shape_cast %178 : vector<1x1x32x16xbf16> to vector<32x16xbf16>
    %cst_112 = arith.constant dense<0.000000e+00> : vector<16x16xf32>
    %180 = tpu.matmul %170, %179, %cst_112 {dimension_numbers = #tpu.dot_dimension_numbers<[1], [0], [0], [1], [0, 0, 1, 1], [], []>} : vector<16x32xbf16>, vector<32x16xbf16>, vector<16x16xf32> -> vector<16x16xf32>
    %181 = vector.shape_cast %174 : vector<16x16xf32> to vector<2x8x16xf32>
    %182 = arith.truncf %181 : vector<2x8x16xf32> to vector<2x8x16xbf16>
    %183 = vector.shape_cast %177 : vector<16x16xf32> to vector<2x8x16xf32>
    %184 = arith.truncf %183 : vector<2x8x16xf32> to vector<2x8x16xbf16>
    %185 = vector.shape_cast %180 : vector<16x16xf32> to vector<2x8x16xf32>
    %186 = arith.truncf %185 : vector<2x8x16xf32> to vector<2x8x16xbf16>
    "tpu.trace_start"() <{level = 10 : i32, message = "bld,bmd->blm"}> : () -> ()
    %cst_113 = arith.constant dense<0.000000e+00> : vector<2x8x8xf32>
    %187 = tpu.matmul %182, %184, %cst_113 {dimension_numbers = #tpu.dot_dimension_numbers<[2], [2], [1], [1], [0, 0, 0, 1, 1, 1], [0], [0]>} : vector<2x8x16xbf16>, vector<2x8x16xbf16>, vector<2x8x8xf32> -> vector<2x8x8xf32>
    "tpu.trace_stop"() : () -> ()
    %188 = arith.addf %187, %0 : vector<2x8x8xf32>
    %cst_114 = arith.constant dense<0xFF800000> : vector<2x8xf32>
    %189 = vector.multi_reduction <maximumf>, %188, %cst_114 [2] : vector<2x8x8xf32> to vector<2x8xf32>
    %190 = vector.shape_cast %189 : vector<2x8xf32> to vector<2x8x1xf32>
    %191 = vector.broadcast %190 : vector<2x8x1xf32> to vector<2x8x8xf32>
    %192 = arith.subf %188, %191 : vector<2x8x8xf32>
    %193 = math.exp %192 : vector<2x8x8xf32>
    %cst_115 = arith.constant dense<0.000000e+00> : vector<2x8xf32>
    %194 = vector.multi_reduction <add>, %193, %cst_115 [2] : vector<2x8x8xf32> to vector<2x8xf32>
    %195 = vector.shape_cast %194 : vector<2x8xf32> to vector<2x8x1xf32>
    %196 = tpu.reciprocal %195 {approx = true} : vector<2x8x1xf32> -> vector<2x8x1xf32>
    %197 = vector.broadcast %196 : vector<2x8x1xf32> to vector<2x8x8xf32>
    %198 = arith.mulf %193, %197 : vector<2x8x8xf32>
    %199 = arith.truncf %198 : vector<2x8x8xf32> to vector<2x8x8xbf16>
    "tpu.trace_start"() <{level = 10 : i32, message = "blm,bmd->bld"}> : () -> ()
    %cst_116 = arith.constant dense<0.000000e+00> : vector<2x8x16xf32>
    %200 = tpu.matmul %199, %186, %cst_116 {dimension_numbers = #tpu.dot_dimension_numbers<[2], [1], [1], [2], [0, 0, 0, 1, 1, 2], [0], [0]>} : vector<2x8x8xbf16>, vector<2x8x16xbf16>, vector<2x8x16xf32> -> vector<2x8x16xf32>
    "tpu.trace_stop"() : () -> ()
    %201 = vector.shape_cast %200 : vector<2x8x16xf32> to vector<16x16xf32>
    %202 = arith.truncf %201 : vector<16x16xf32> to vector<16x16xbf16>
    %c1_117 = arith.constant 1 : index
    %c0_118 = arith.constant 0 : index
    %c0_119 = arith.constant 0 : index
    %c0_120 = arith.constant 0 : index
    %203 = vector.load %arg8[%c1_117, %c0_118, %c0_119, %c0_120] : memref<2x2x16x32xbf16, #tpu.memory_space<vmem>>, vector<1x1x16x32xbf16>
    %204 = vector.shape_cast %203 : vector<1x1x16x32xbf16> to vector<16x32xbf16>
    %cst_121 = arith.constant dense<0.000000e+00> : vector<16x32xf32>
    %205 = tpu.matmul %202, %204, %cst_121 {dimension_numbers = #tpu.dot_dimension_numbers<[1], [0], [0], [1], [0, 0, 1, 1], [], []>} : vector<16x16xbf16>, vector<16x32xbf16>, vector<16x32xf32> -> vector<16x32xf32>
    %206 = arith.addf %171, %205 : vector<16x32xf32>
    %c1_122 = arith.constant 1 : index
    %c1_123 = arith.constant 1 : index
    %c0_124 = arith.constant 0 : index
    %c0_125 = arith.constant 0 : index
    %207 = vector.load %arg5[%c1_122, %c1_123, %c0_124, %c0_125] : memref<2x2x32x16xbf16, #tpu.memory_space<vmem>>, vector<1x1x32x16xbf16>
    %208 = vector.shape_cast %207 : vector<1x1x32x16xbf16> to vector<32x16xbf16>
    %cst_126 = arith.constant dense<0.000000e+00> : vector<16x16xf32>
    %209 = tpu.matmul %170, %208, %cst_126 {dimension_numbers = #tpu.dot_dimension_numbers<[1], [0], [0], [1], [0, 0, 1, 1], [], []>} : vector<16x32xbf16>, vector<32x16xbf16>, vector<16x16xf32> -> vector<16x16xf32>
    %c1_127 = arith.constant 1 : index
    %c1_128 = arith.constant 1 : index
    %c0_129 = arith.constant 0 : index
    %c0_130 = arith.constant 0 : index
    %210 = vector.load %arg6[%c1_127, %c1_128, %c0_129, %c0_130] : memref<2x2x32x16xbf16, #tpu.memory_space<vmem>>, vector<1x1x32x16xbf16>
    %211 = vector.shape_cast %210 : vector<1x1x32x16xbf16> to vector<32x16xbf16>
    %cst_131 = arith.constant dense<0.000000e+00> : vector<16x16xf32>
    %212 = tpu.matmul %170, %211, %cst_131 {dimension_numbers = #tpu.dot_dimension_numbers<[1], [0], [0], [1], [0, 0, 1, 1], [], []>} : vector<16x32xbf16>, vector<32x16xbf16>, vector<16x16xf32> -> vector<16x16xf32>
    %c1_132 = arith.constant 1 : index
    %c1_133 = arith.constant 1 : index
    %c0_134 = arith.constant 0 : index
    %c0_135 = arith.constant 0 : index
    %213 = vector.load %arg7[%c1_132, %c1_133, %c0_134, %c0_135] : memref<2x2x32x16xbf16, #tpu.memory_space<vmem>>, vector<1x1x32x16xbf16>
    %214 = vector.shape_cast %213 : vector<1x1x32x16xbf16> to vector<32x16xbf16>
    %cst_136 = arith.constant dense<0.000000e+00> : vector<16x16xf32>
    %215 = tpu.matmul %170, %214, %cst_136 {dimension_numbers = #tpu.dot_dimension_numbers<[1], [0], [0], [1], [0, 0, 1, 1], [], []>} : vector<16x32xbf16>, vector<32x16xbf16>, vector<16x16xf32> -> vector<16x16xf32>
    %216 = vector.shape_cast %209 : vector<16x16xf32> to vector<2x8x16xf32>
    %217 = arith.truncf %216 : vector<2x8x16xf32> to vector<2x8x16xbf16>
    %218 = vector.shape_cast %212 : vector<16x16xf32> to vector<2x8x16xf32>
    %219 = arith.truncf %218 : vector<2x8x16xf32> to vector<2x8x16xbf16>
    %220 = vector.shape_cast %215 : vector<16x16xf32> to vector<2x8x16xf32>
    %221 = arith.truncf %220 : vector<2x8x16xf32> to vector<2x8x16xbf16>
    "tpu.trace_start"() <{level = 10 : i32, message = "bld,bmd->blm"}> : () -> ()
    %cst_137 = arith.constant dense<0.000000e+00> : vector<2x8x8xf32>
    %222 = tpu.matmul %217, %219, %cst_137 {dimension_numbers = #tpu.dot_dimension_numbers<[2], [2], [1], [1], [0, 0, 0, 1, 1, 1], [0], [0]>} : vector<2x8x16xbf16>, vector<2x8x16xbf16>, vector<2x8x8xf32> -> vector<2x8x8xf32>
    "tpu.trace_stop"() : () -> ()
    %223 = arith.addf %222, %0 : vector<2x8x8xf32>
    %cst_138 = arith.constant dense<0xFF800000> : vector<2x8xf32>
    %224 = vector.multi_reduction <maximumf>, %223, %cst_138 [2] : vector<2x8x8xf32> to vector<2x8xf32>
    %225 = vector.shape_cast %224 : vector<2x8xf32> to vector<2x8x1xf32>
    %226 = vector.broadcast %225 : vector<2x8x1xf32> to vector<2x8x8xf32>
    %227 = arith.subf %223, %226 : vector<2x8x8xf32>
    %228 = math.exp %227 : vector<2x8x8xf32>
    %cst_139 = arith.constant dense<0.000000e+00> : vector<2x8xf32>
    %229 = vector.multi_reduction <add>, %228, %cst_139 [2] : vector<2x8x8xf32> to vector<2x8xf32>
    %230 = vector.shape_cast %229 : vector<2x8xf32> to vector<2x8x1xf32>
    %231 = tpu.reciprocal %230 {approx = true} : vector<2x8x1xf32> -> vector<2x8x1xf32>
    %232 = vector.broadcast %231 : vector<2x8x1xf32> to vector<2x8x8xf32>
    %233 = arith.mulf %228, %232 : vector<2x8x8xf32>
    %234 = arith.truncf %233 : vector<2x8x8xf32> to vector<2x8x8xbf16>
    "tpu.trace_start"() <{level = 10 : i32, message = "blm,bmd->bld"}> : () -> ()
    %cst_140 = arith.constant dense<0.000000e+00> : vector<2x8x16xf32>
    %235 = tpu.matmul %234, %221, %cst_140 {dimension_numbers = #tpu.dot_dimension_numbers<[2], [1], [1], [2], [0, 0, 0, 1, 1, 2], [0], [0]>} : vector<2x8x8xbf16>, vector<2x8x16xbf16>, vector<2x8x16xf32> -> vector<2x8x16xf32>
    "tpu.trace_stop"() : () -> ()
    %236 = vector.shape_cast %235 : vector<2x8x16xf32> to vector<16x16xf32>
    %237 = arith.truncf %236 : vector<16x16xf32> to vector<16x16xbf16>
    %c1_141 = arith.constant 1 : index
    %c1_142 = arith.constant 1 : index
    %c0_143 = arith.constant 0 : index
    %c0_144 = arith.constant 0 : index
    %238 = vector.load %arg8[%c1_141, %c1_142, %c0_143, %c0_144] : memref<2x2x16x32xbf16, #tpu.memory_space<vmem>>, vector<1x1x16x32xbf16>
    %239 = vector.shape_cast %238 : vector<1x1x16x32xbf16> to vector<16x32xbf16>
    %cst_145 = arith.constant dense<0.000000e+00> : vector<16x32xf32>
    %240 = tpu.matmul %237, %239, %cst_145 {dimension_numbers = #tpu.dot_dimension_numbers<[1], [0], [0], [1], [0, 0, 1, 1], [], []>} : vector<16x16xbf16>, vector<16x32xbf16>, vector<16x32xf32> -> vector<16x32xf32>
    %241 = arith.addf %206, %240 : vector<16x32xf32>
    %242 = arith.addf %241, %169 : vector<16x32xf32>
    %c1_146 = arith.constant 1 : index
    %c0_147 = arith.constant 0 : index
    %c0_148 = arith.constant 0 : index
    %243 = vector.load %arg9[%c1_146, %c0_147, %c0_148] : memref<2x1x32xf32, #tpu.memory_space<vmem>>, vector<1x1x32xf32>
    %244 = vector.shape_cast %243 : vector<1x1x32xf32> to vector<1x32xf32>
    %c1_149 = arith.constant 1 : index
    %c0_150 = arith.constant 0 : index
    %c0_151 = arith.constant 0 : index
    %245 = vector.load %arg10[%c1_149, %c0_150, %c0_151] : memref<2x1x32xf32, #tpu.memory_space<vmem>>, vector<1x1x32xf32>
    %246 = vector.shape_cast %245 : vector<1x1x32xf32> to vector<1x32xf32>
    %cst_152 = arith.constant dense<0.000000e+00> : vector<16xf32>
    %247 = vector.multi_reduction <add>, %242, %cst_152 [1] : vector<16x32xf32> to vector<16xf32>
    %248 = vector.shape_cast %247 : vector<16xf32> to vector<16x1xf32>
    %cst_153 = arith.constant 3.200000e+01 : f32
    %249 = vector.broadcast %cst_153 : f32 to vector<16x1xf32>
    %250 = arith.divf %248, %249 : vector<16x1xf32>
    %251 = vector.broadcast %250 : vector<16x1xf32> to vector<16x32xf32>
    %252 = arith.subf %242, %251 : vector<16x32xf32>
    %253 = arith.mulf %252, %252 : vector<16x32xf32>
    %cst_154 = arith.constant dense<0.000000e+00> : vector<16xf32>
    %254 = vector.multi_reduction <add>, %253, %cst_154 [1] : vector<16x32xf32> to vector<16xf32>
    %255 = vector.shape_cast %254 : vector<16xf32> to vector<16x1xf32>
    %cst_155 = arith.constant 3.200000e+01 : f32
    %256 = vector.broadcast %cst_155 : f32 to vector<16x1xf32>
    %257 = arith.divf %255, %256 : vector<16x1xf32>
    %258 = vector.broadcast %250 : vector<16x1xf32> to vector<16x32xf32>
    %259 = arith.subf %242, %258 : vector<16x32xf32>
    %cst_156 = arith.constant 9.99999997E-7 : f32
    %260 = vector.broadcast %cst_156 : f32 to vector<16x1xf32>
    %261 = arith.addf %257, %260 : vector<16x1xf32>
    %262 = math.rsqrt %261 : vector<16x1xf32>
    %263 = vector.broadcast %262 : vector<16x1xf32> to vector<16x32xf32>
    %264 = arith.mulf %259, %263 : vector<16x32xf32>
    %265 = vector.broadcast %244 : vector<1x32xf32> to vector<16x32xf32>
    %266 = arith.mulf %264, %265 : vector<16x32xf32>
    %267 = vector.broadcast %246 : vector<1x32xf32> to vector<16x32xf32>
    %268 = arith.addf %266, %267 : vector<16x32xf32>
    %269 = arith.truncf %268 : vector<16x32xf32> to vector<16x32xbf16>
    %c1_157 = arith.constant 1 : index
    %c0_158 = arith.constant 0 : index
    %c0_159 = arith.constant 0 : index
    %270 = vector.load %arg11[%c1_157, %c0_158, %c0_159] : memref<2x32x64xbf16, #tpu.memory_space<vmem>>, vector<1x32x64xbf16>
    %271 = vector.shape_cast %270 : vector<1x32x64xbf16> to vector<32x64xbf16>
    %cst_160 = arith.constant dense<0.000000e+00> : vector<16x64xf32>
    %272 = tpu.matmul %269, %271, %cst_160 {dimension_numbers = #tpu.dot_dimension_numbers<[1], [0], [0], [1], [0, 0, 1, 1], [], []>} : vector<16x32xbf16>, vector<32x64xbf16>, vector<16x64xf32> -> vector<16x64xf32>
    %c1_161 = arith.constant 1 : index
    %c0_162 = arith.constant 0 : index
    %c0_163 = arith.constant 0 : index
    %273 = vector.load %arg12[%c1_161, %c0_162, %c0_163] : memref<2x1x64xf32, #tpu.memory_space<vmem>>, vector<1x1x64xf32>
    %274 = vector.shape_cast %273 : vector<1x1x64xf32> to vector<1x64xf32>
    %275 = vector.broadcast %274 : vector<1x64xf32> to vector<16x64xf32>
    %276 = arith.addf %272, %275 : vector<16x64xf32>
    %cst_164 = arith.constant 0.000000e+00 : f32
    %277 = vector.broadcast %cst_164 : f32 to vector<16x64xf32>
    %278 = arith.maximumf %276, %277 : vector<16x64xf32>
    %279 = arith.truncf %278 : vector<16x64xf32> to vector<16x64xbf16>
    %c1_165 = arith.constant 1 : index
    %c0_166 = arith.constant 0 : index
    %c0_167 = arith.constant 0 : index
    %280 = vector.load %arg13[%c1_165, %c0_166, %c0_167] : memref<2x64x32xbf16, #tpu.memory_space<vmem>>, vector<1x64x32xbf16>
    %281 = vector.shape_cast %280 : vector<1x64x32xbf16> to vector<64x32xbf16>
    %cst_168 = arith.constant dense<0.000000e+00> : vector<16x32xf32>
    %282 = tpu.matmul %279, %281, %cst_168 {dimension_numbers = #tpu.dot_dimension_numbers<[1], [0], [0], [1], [0, 0, 1, 1], [], []>} : vector<16x64xbf16>, vector<64x32xbf16>, vector<16x32xf32> -> vector<16x32xf32>
    %c1_169 = arith.constant 1 : index
    %c0_170 = arith.constant 0 : index
    %c0_171 = arith.constant 0 : index
    %283 = vector.load %arg14[%c1_169, %c0_170, %c0_171] : memref<2x1x32xf32, #tpu.memory_space<vmem>>, vector<1x1x32xf32>
    %284 = vector.shape_cast %283 : vector<1x1x32xf32> to vector<1x32xf32>
    %285 = vector.broadcast %284 : vector<1x32xf32> to vector<16x32xf32>
    %286 = arith.addf %282, %285 : vector<16x32xf32>
    %287 = arith.addf %286, %268 : vector<16x32xf32>
    %c1_172 = arith.constant 1 : index
    %c0_173 = arith.constant 0 : index
    %c0_174 = arith.constant 0 : index
    %288 = vector.load %arg15[%c1_172, %c0_173, %c0_174] : memref<2x1x32xf32, #tpu.memory_space<vmem>>, vector<1x1x32xf32>
    %289 = vector.shape_cast %288 : vector<1x1x32xf32> to vector<1x32xf32>
    %c1_175 = arith.constant 1 : index
    %c0_176 = arith.constant 0 : index
    %c0_177 = arith.constant 0 : index
    %290 = vector.load %arg16[%c1_175, %c0_176, %c0_177] : memref<2x1x32xf32, #tpu.memory_space<vmem>>, vector<1x1x32xf32>
    %291 = vector.shape_cast %290 : vector<1x1x32xf32> to vector<1x32xf32>
    %cst_178 = arith.constant dense<0.000000e+00> : vector<16xf32>
    %292 = vector.multi_reduction <add>, %287, %cst_178 [1] : vector<16x32xf32> to vector<16xf32>
    %293 = vector.shape_cast %292 : vector<16xf32> to vector<16x1xf32>
    %cst_179 = arith.constant 3.200000e+01 : f32
    %294 = vector.broadcast %cst_179 : f32 to vector<16x1xf32>
    %295 = arith.divf %293, %294 : vector<16x1xf32>
    %296 = vector.broadcast %295 : vector<16x1xf32> to vector<16x32xf32>
    %297 = arith.subf %287, %296 : vector<16x32xf32>
    %298 = arith.mulf %297, %297 : vector<16x32xf32>
    %cst_180 = arith.constant dense<0.000000e+00> : vector<16xf32>
    %299 = vector.multi_reduction <add>, %298, %cst_180 [1] : vector<16x32xf32> to vector<16xf32>
    %300 = vector.shape_cast %299 : vector<16xf32> to vector<16x1xf32>
    %cst_181 = arith.constant 3.200000e+01 : f32
    %301 = vector.broadcast %cst_181 : f32 to vector<16x1xf32>
    %302 = arith.divf %300, %301 : vector<16x1xf32>
    %303 = vector.broadcast %295 : vector<16x1xf32> to vector<16x32xf32>
    %304 = arith.subf %287, %303 : vector<16x32xf32>
    %cst_182 = arith.constant 9.99999997E-7 : f32
    %305 = vector.broadcast %cst_182 : f32 to vector<16x1xf32>
    %306 = arith.addf %302, %305 : vector<16x1xf32>
    %307 = math.rsqrt %306 : vector<16x1xf32>
    %308 = vector.broadcast %307 : vector<16x1xf32> to vector<16x32xf32>
    %309 = arith.mulf %304, %308 : vector<16x32xf32>
    %310 = vector.broadcast %289 : vector<1x32xf32> to vector<16x32xf32>
    %311 = arith.mulf %309, %310 : vector<16x32xf32>
    %312 = vector.broadcast %291 : vector<1x32xf32> to vector<16x32xf32>
    %313 = arith.addf %311, %312 : vector<16x32xf32>
    %c0_183 = arith.constant 0 : index
    %c0_184 = arith.constant 0 : index
    %314 = vector.load %arg17[%c0_183, %c0_184] : memref<16x32xf32, #tpu.memory_space<vmem>>, vector<16x32xf32>
    tpu.vector_store %arg17[%c0_183, %c0_184], %313 {strides = array<i32>} : memref<16x32xf32, #tpu.memory_space<vmem>>, vector<16x32xf32>,
    return
  }
  func.func @transform_0(%arg0: i32) -> (i32, i32) {
    %c0_i32 = arith.constant 0 : i32
    %c0_i32_0 = arith.constant 0 : i32
    %c0_i32_1 = arith.constant 0 : i32
    return %c0_i32, %c0_i32_0 : i32, i32
  }
  func.func @transform_1(%arg0: i32) -> (i32, i32, i32) {
    %c0_i32 = arith.constant 0 : i32
    %c0_i32_0 = arith.constant 0 : i32
    %c0_i32_1 = arith.constant 0 : i32
    %c0_i32_2 = arith.constant 0 : i32
    return %c0_i32, %c0_i32_0, %c0_i32_1 : i32, i32, i32
  }
  func.func @transform_2(%arg0: i32) -> (i32, i32) {
    %c0_i32 = arith.constant 0 : i32
    %c0_i32_0 = arith.constant 0 : i32
    %c0_i32_1 = arith.constant 0 : i32
    return %c0_i32, %c0_i32_0 : i32, i32
  }
  func.func @transform_3(%arg0: i32) -> (i32, i32) {
    %c0_i32 = arith.constant 0 : i32
    %c0_i32_0 = arith.constant 0 : i32
    %c0_i32_1 = arith.constant 0 : i32
    return %c0_i32, %c0_i32_0 : i32, i32
  }
  func.func @transform_4(%arg0: i32) -> (i32, i32, i32, i32) {
    %c0_i32 = arith.constant 0 : i32
    %c0_i32_0 = arith.constant 0 : i32
    %c0_i32_1 = arith.constant 0 : i32
    %c0_i32_2 = arith.constant 0 : i32
    %c0_i32_3 = arith.constant 0 : i32
    return %c0_i32, %c0_i32_0, %c0_i32_1, %c0_i32_2 : i32, i32, i32, i32
  }
  func.func @transform_5(%arg0: i32) -> (i32, i32, i32, i32) {
    %c0_i32 = arith.constant 0 : i32
    %c0_i32_0 = arith.constant 0 : i32
    %c0_i32_1 = arith.constant 0 : i32
    %c0_i32_2 = arith.constant 0 : i32
    %c0_i32_3 = arith.constant 0 : i32
    return %c0_i32, %c0_i32_0, %c0_i32_1, %c0_i32_2 : i32, i32, i32, i32
  }
  func.func @transform_6(%arg0: i32) -> (i32, i32, i32, i32) {
    %c0_i32 = arith.constant 0 : i32
    %c0_i32_0 = arith.constant 0 : i32
    %c0_i32_1 = arith.constant 0 : i32
    %c0_i32_2 = arith.constant 0 : i32
    %c0_i32_3 = arith.constant 0 : i32
    return %c0_i32, %c0_i32_0, %c0_i32_1, %c0_i32_2 : i32, i32, i32, i32
  }
  func.func @transform_7(%arg0: i32) -> (i32, i32, i32, i32) {
    %c0_i32 = arith.constant 0 : i32
    %c0_i32_0 = arith.constant 0 : i32
    %c0_i32_1 = arith.constant 0 : i32
    %c0_i32_2 = arith.constant 0 : i32
    %c0_i32_3 = arith.constant 0 : i32
    return %c0_i32, %c0_i32_0, %c0_i32_1, %c0_i32_2 : i32, i32, i32, i32
  }
  func.func @transform_8(%arg0: i32) -> (i32, i32, i32) {
    %c0_i32 = arith.constant 0 : i32
    %c0_i32_0 = arith.constant 0 : i32
    %c0_i32_1 = arith.constant 0 : i32
    %c0_i32_2 = arith.constant 0 : i32
    return %c0_i32, %c0_i32_0, %c0_i32_1 : i32, i32, i32
  }
  func.func @transform_9(%arg0: i32) -> (i32, i32, i32) {
    %c0_i32 = arith.constant 0 : i32
    %c0_i32_0 = arith.constant 0 : i32
    %c0_i32_1 = arith.constant 0 : i32
    %c0_i32_2 = arith.constant 0 : i32
    return %c0_i32, %c0_i32_0, %c0_i32_1 : i32, i32, i32
  }
  func.func @transform_10(%arg0: i32) -> (i32, i32, i32) {
    %c0_i32 = arith.constant 0 : i32
    %c0_i32_0 = arith.constant 0 : i32
    %c0_i32_1 = arith.constant 0 : i32
    %c0_i32_2 = arith.constant 0 : i32
    return %c0_i32, %c0_i32_0, %c0_i32_1 : i32, i32, i32
  }
  func.func @transform_11(%arg0: i32) -> (i32, i32, i32) {
    %c0_i32 = arith.constant 0 : i32
    %c0_i32_0 = arith.constant 0 : i32
    %c0_i32_1 = arith.constant 0 : i32
    %c0_i32_2 = arith.constant 0 : i32
    return %c0_i32, %c0_i32_0, %c0_i32_1 : i32, i32, i32
  }
  func.func @transform_12(%arg0: i32) -> (i32, i32, i32) {
    %c0_i32 = arith.constant 0 : i32
    %c0_i32_0 = arith.constant 0 : i32
    %c0_i32_1 = arith.constant 0 : i32
    %c0_i32_2 = arith.constant 0 : i32
    return %c0_i32, %c0_i32_0, %c0_i32_1 : i32, i32, i32
  }
  func.func @transform_13(%arg0: i32) -> (i32, i32, i32) {
    %c0_i32 = arith.constant 0 : i32
    %c0_i32_0 = arith.constant 0 : i32
    %c0_i32_1 = arith.constant 0 : i32
    %c0_i32_2 = arith.constant 0 : i32
    return %c0_i32, %c0_i32_0, %c0_i32_1 : i32, i32, i32
  }
  func.func @transform_14(%arg0: i32) -> (i32, i32, i32) {
    %c0_i32 = arith.constant 0 : i32
    %c0_i32_0 = arith.constant 0 : i32
    %c0_i32_1 = arith.constant 0 : i32
    %c0_i32_2 = arith.constant 0 : i32
    return %c0_i32, %c0_i32_0, %c0_i32_1 : i32, i32, i32
  }
  func.func @transform_15(%arg0: i32) -> (i32, i32, i32) {
    %c0_i32 = arith.constant 0 : i32
    %c0_i32_0 = arith.constant 0 : i32
    %c0_i32_1 = arith.constant 0 : i32
    %c0_i32_2 = arith.constant 0 : i32
    return %c0_i32, %c0_i32_0, %c0_i32_1 : i32, i32, i32
  }
  func.func @transform_16(%arg0: i32) -> (i32, i32) {
    %c0_i32 = arith.constant 0 : i32
    %c0_i32_0 = arith.constant 0 : i32
    %c0_i32_1 = arith.constant 0 : i32
    return %c0_i32, %c0_i32_0 : i32, i32
  }
}

</mosaic_0001>

<bundles_post_ra>
// kernel: encoder_forward.1
= control target key start
LH: loop header
LB: loop body
LE: loop exit
PB: predicated region body
PF: predicated region fallthrough
CT: control target
= control target key end

     0   :  { %s3574_s0 = inlined_call_operand.vmem [shape: f32[16,32], index: 0, kind: input, shape index: {}]   ;;  %s3575_s1 = inlined_call_operand.vmem [shape: f32[2,8,8], index: 1, kind: input, shape index: {}]   ;;  %s3576_s2 = inlined_call_operand.vmem [shape: f32[1,32], index: 2, kind: input, shape index: {}]   ;;  %s3577_s3 = inlined_call_operand.vmem [shape: f32[1,32], index: 3, kind: input, shape index: {}]   ;;  %s3578_s4 = inlined_call_operand.vmem [shape: bf16[2,2,32,16], index: 4, kind: input, shape index: {}]   ;;  %s3579_s5 = inlined_call_operand.vmem [shape: bf16[2,2,32,16], index: 5, kind: input, shape index: {}]   ;;  %s3580_s6 = inlined_call_operand.vmem [shape: bf16[2,2,32,16], index: 6, kind: input, shape index: {}]   ;;  %s3581_s7 = inlined_call_operand.vmem [shape: bf16[2,2,16,32], index: 7, kind: input, shape index: {}]   ;;  %s3582_s8 = inlined_call_operand.vmem [shape: f32[2,1,32], index: 8, kind: input, shape index: {}]   ;;  %s3583_s9 = inlined_call_operand.vmem [shape: f32[2,1,32], index: 9, kind: input, shape index: {}]   ;;  %s3584_s10 = inlined_call_operand.vmem [shape: bf16[2,32,64], index: 10, kind: input, shape index: {}]   ;;  %s3585_s11 = inlined_call_operand.vmem [shape: f32[2,1,64], index: 11, kind: input, shape index: {}]   ;;  %s3586_s12 = inlined_call_operand.vmem [shape: bf16[2,64,32], index: 12, kind: input, shape index: {}]   ;;  %s3587_s13 = inlined_call_operand.vmem [shape: f32[2,1,32], index: 13, kind: input, shape index: {}]   ;;  %s3588_s14 = inlined_call_operand.vmem [shape: f32[2,1,32], index: 14, kind: input, shape index: {}]   ;;  %s3589_s15 = inlined_call_operand.vmem [shape: f32[2,1,32], index: 15, kind: input, shape index: {}]   ;;  %s3590_s16 = inlined_call_operand.hbm [shape: f32[16,32], index: 16, kind: output, shape index: {}]  }
   0x1   :  { %3592 = sst [smem:[#allocation5_spill]] %s3574_s0 }
   0x2   :  { %s3593_s23 = sld [smem:[#allocation5_spill]]  ;;  %vm61_vm0 = vcmask 261120  }
   0x8   :  { %v57_v0 = vld [vmem:[%s3593_s23] sm:$0xff]  ;;  %v58_v1 = vld [vmem:[%s3593_s23 + $0x8] sm:$0xff] }
   0x9   :  { %v62_v2 = vsel %vm61_vm0, %v57_v0, 0.0  ;;  %v65_v3 = vsel %vm61_vm0, %v58_v1, 0.0 }
   0xa   :  { %63 = vadd.xlane.f32.xlu0 %v62_v2 }
   0xe   :  { %66 = vadd.xlane.f32.xlu0 %v65_v3 }
   0xf   :  { %21 = vsyncpa [#allocation3], 0  ;;  %v2902_v14 = vld [vmem:[%s3578_s4] sm:$0xff]   ;;  %v3018_v16 = vmov 0.0   ;;  %v2904_v17 = vld [vmem:[%s3578_s4 + $0x8] sm:$0xff]   ;;  %vm3019_vm1 = vmmov 0  }
  0x10   :  { %v2903_v15 = vld [vmem:[%s3580_s6] sm:$0xff]   ;;  %2641 = vmatprep.subr.bf16.mxu1 %v3018_v16  ;;  %2657 = vmatprep.subr.bf16.mxu0 %v3018_v16  ;;  %v2905_v18 = vld [vmem:[%s3580_s6 + $0x8] sm:$0xff]   ;;  %vm286_vm2 = vcmask 130048   ;;  %vm407_vm3 = vcmask 1043456   ;;  %vm379_vm4 = vcmask 64512   ;;  %vm1148_vm5 = vcmask 523264  }
  0x11   :  { %2642 = vmatpush3.bf16.msra.mxu1 %v2902_v14  ;;  %2658 = vmatpush3.bf16.msra.mxu0 %v2903_v15  ;;  %v2399_v27 = vld [vmem:[%s3576_s2] ss:$0 sm:$0xff]  ;;  %v2907_v37 = vld [vmem:[%s3579_s5 + $0x8] sm:$0xff]  }
  0x12   :  { %2643 = vmatprep.subr.bf16.mxu1 %v3018_v16  ;;  %2659 = vmatprep.subr.bf16.mxu0 %v3018_v16  ;;  %v2400_v31 = vld [vmem:[%s3577_s3] ss:$0 sm:$0xff]  ;;  %v3196_v62 = vld [vmem:[%s3575_s1 + $0x8] sm:$0xff] }
  0x13   :  { %2645 = vmatprep.mubr.msk.bf16.mxu1 %vm3019_vm1, %v3018_v16  ;;  %2661 = vmatprep.mubr.msk.bf16.mxu0 %vm3019_vm1, %v3018_v16  ;;  %v2906_v35 = vld [vmem:[%s3579_s5] sm:$0xff]  }
  0x14   :  { %v3191_v60 = vld [vmem:[%s3575_s1] sm:$0xff] }
  0x15   :  { %2644 = vmatpush3.bf16.msra.mxu1 %v2904_v17  ;;  %2660 = vmatpush3.bf16.msra.mxu0 %v2905_v18 }
  0x16   :  { %2649 = vmatprep.subr.bf16.mxu1 %v3018_v16  ;;  %2671 = vmatprep.subr.bf16.mxu0 %v3018_v16 }
  0x97   :  { %v64_v4 = vpop.xlane.xlu0 %63 }
  0x98   :  { %v69_v5 = vmul.f32 0.03125, %v64_v4 }
  0x9a   :  { %v71_v6 = vsub.f32 %v57_v0, %v69_v5 }
  0x9b   :  { %v67_v7 = vpop.xlane.xlu0 %66 }
  0x9c   :  { %v70_v8 = vmul.f32 0.03125, %v67_v7  ;;  %v73_v9 = vmul.f32 %v71_v6, %v71_v6 }
  0x9e   :  { %v72_v10 = vsub.f32 %v58_v1, %v70_v8  ;;  %v75_v11 = vsel %vm61_vm0, %v73_v9, 0.0 }
  0x9f   :  { %76 = vadd.xlane.f32.xlu1 %v75_v11 }
  0xa0   :  { %v74_v12 = vmul.f32 %v72_v10, %v72_v10 }
  0xa2   :  { %v78_v13 = vsel %vm61_vm0, %v74_v12, 0.0 }
  0xa3   :  { %79 = vadd.xlane.f32.xlu1 %v78_v13 }
 0x12c   :  { %v77_v19 = vpop.xlane.xlu1 %76 }
 0x12d   :  { %v81_v20 = vmul.f32 0.03125, %v77_v19 }
 0x12f   :  { %v83_v21 = vadd.f32 1e-06, %v81_v20 }
 0x130   :  { %v80_v22 = vpop.xlane.xlu1 %79 }
 0x131   :  { %2942 = vrsqrt.f32 %v83_v21  ;;  %v82_v23 = vmul.f32 0.03125, %v80_v22 }
 0x133   :  { %v84_v24 = vadd.f32 1e-06, %v82_v23 }
 0x135   :  { %2944 = vrsqrt.f32 %v84_v24 }
 0x13b   :  { %v2943_v25 = vpop.eup %2942 }
 0x13c   :  { %v87_v26 = vmul.f32 %v2943_v25, %v71_v6 }
 0x13e   :  { %v95_v29 = vmul.f32 %v2399_v27, %v87_v26  ;;  %v2908_v26 = vld [vmem:[%s3578_s4 + $0x10] sm:$0xff]  }
 0x13f   :  { %v2945_v28 = vpop.eup %2944 }
 0x140   :  { %v88_v30 = vmul.f32 %v2945_v28, %v72_v10  ;;  %v3146_v33 = vadd.f32 %v2400_v31, %v95_v29  ;;  %v2909_v29 = vld [vmem:[%s3579_s5 + $0x10] sm:$0xff]  }
 0x142   :  { %v96_v32 = vmul.f32 %v2399_v27, %v88_v30 }
 0x144   :  { %v3148_v34 = vadd.f32 %v2400_v31, %v96_v32  ;;  %v2910_v31 = vld [vmem:[%s3578_s4 + $0x18] sm:$0xff]  }
 0x145   :  { %v2911_v32 = vld [vmem:[%s3579_s5 + $0x18] sm:$0xff]  }
 0x146   :  { %v3155_v36 = vpack.c.bf16 %v3148_v34, %v3146_v33 }
 0x148   :  { %2646 = vmatmul.mubr.msk.bf16.vlgmr.msra.gmra.mrb[0].mxu1 %vm61_vm0, %v3155_v36  ;;  %2662 = vmatmul.mubr.msk.bf16.vlgmr.msra.gmra.mrb[0].mxu0 %vm61_vm0, %v3155_v36 }
 0x149   :  { %2650 = vmatpush3.bf16.msra.mxu1 %v2906_v35  ;;  %2653 = vmatprep.mubr.msk.bf16.mxu1 %vm3019_vm1, %v3018_v16  ;;  %v2912_v35 = vld [vmem:[%s3580_s6 + $0x10] sm:$0xff]  }
 0x14a   :  { %2651 = vmatprep.subr.bf16.mxu1 %v3018_v16  ;;  %2673 = vmatprep.mubr.msk.bf16.mxu0 %vm3019_vm1, %v3018_v16 }
 0x14d   :  { %2652 = vmatpush3.bf16.msra.mxu1 %v2907_v37  ;;  %v2913_v37 = vld [vmem:[%s3580_s6 + $0x18] sm:$0xff]  }
 0x14e   :  { %2665 = vmatprep.subr.bf16.mxu1 %v3018_v16 }
 0x150   :  { %2654 = vmatmul.mubr.msk.bf16.vlgmr.msra.gmra.mrb[4].mxu1 %vm61_vm0, %v3155_v36 }
 0x151   :  { %2667 = vmatprep.mubr.msk.bf16.mxu1 %vm3019_vm1, %v3018_v16 }
 0x21b   :  { %v159_v38 = vpop.f32.mrb[0].mxu1  ;;  %v273_v39 = vpop.f32.mrb[0].mxu0 }
 0x21c   :  { %v2647_v40 = vpop.f32.mrb[1].mxu1  ;;  %v2663_v41 = vpop.f32.mrb[1].mxu0  ;;  %v284_v54 = vpack.c.bf16 %v273_v39, %v273_v39  ;;  %v280_v55 = vpack.c.bf16 %v159_v38, %v159_v38 }
 0x21d   :  { %v162_v42 = vpop.f32.mrb[2].mxu1  ;;  %v276_v43 = vpop.f32.mrb[2].mxu0 }
 0x21e   :  { %v2648_v44 = vpop.f32.mrb[3].mxu1  ;;  %v2664_v45 = vpop.f32.mrb[3].mxu0  ;;  %v285_v56 = vpack.c.bf16 %v276_v43, %v276_v43  ;;  %v409_v57 = vsel %vm407_vm3, %v284_v54, 0  ;;  %v281_v58 = vpack.c.bf16 %v162_v42, %v162_v42 }
 0x220   :  { %v455_v59 = vsel %vm407_vm3, %v285_v56, 0 }
 0x223   :  { %v216_v46 = vpop.f32.mrb[4].mxu1 }
 0x224   :  { %v282_v47 = vpack.c.bf16 %v216_v46, %v216_v46  ;;  %v2655_v48 = vpop.f32.mrb[5].mxu1 }
 0x225   :  { %v219_v49 = vpop.f32.mrb[6].mxu1 }
 0x226   :  { %v291_v50 = vsel %vm286_vm2, %v282_v47, 0  ;;  %v283_v51 = vpack.c.bf16 %v219_v49, %v219_v49  ;;  %v2656_v52 = vpop.f32.mrb[7].mxu1 }
 0x227   :  { %2666 = vmatpush3.bf16.xpose.msra.mxu1 %v291_v50 }
 0x228   :  { %v337_v53 = vsel %vm286_vm2, %v283_v51, 0  ;;  %2677 = vmatprep.subr.bf16.mxu1 %v3018_v16 }
 0x229   :  { %2672 = vmatpush3.bf16.xpose.msra.mxu0 %v337_v53 }
 0x22a   :  { %2683 = vmatprep.subr.bf16.mxu0 %v3018_v16 }
 0x22e   :  { %2668 = vmatmul.mubr.msk.bf16.vlgmr.msra.gmra.mrb[8].mxu1 %vm286_vm2, %v280_v55 }
 0x22f   :  { %2678 = vmatpush3.bf16.msra.mxu1 %v409_v57  ;;  %2679 = vmatprep.mubr.msk.bf16.mxu1 %vm3019_vm1, %v3018_v16 }
 0x230   :  { %2674 = vmatmul.mubr.msk.bf16.vlgmr.msra.gmra.mrb[4].mxu0 %vm286_vm2, %v281_v58  ;;  %2689 = vmatprep.subr.bf16.mxu1 %v3018_v16 }
 0x231   :  { %2684 = vmatpush3.bf16.msra.mxu0 %v455_v59  ;;  %2685 = vmatprep.mubr.msk.bf16.mxu0 %vm3019_vm1, %v3018_v16 }
 0x232   :  { %2697 = vmatprep.subr.bf16.mxu0 %v3018_v16 }
 0x301   :  { %v327_v61 = vpop.f32.mrb[8].mxu1 }
 0x302   :  { %v328_v63 = vadd.f32 %v327_v61, %v3191_v60  ;;  %v2669_v0 = vpop.f32.mrb[9].mxu1 }
 0x303   :  { %v330_v1 = vpop.f32.mrb[10].mxu1  ;;  %v373_v2 = vpop.f32.mrb[4].mxu0 }
 0x304   :  { %v374_v3 = vadd.f32 %v373_v2, %v3196_v62  ;;  %v2670_v4 = vpop.f32.mrb[11].mxu1  ;;  %v2675_v5 = vpop.f32.mrb[5].mxu0  ;;  %v380_v6 = vsel %vm379_vm4, %v328_v63, -inf }
 0x305   :  { %v376_v7 = vpop.f32.mrb[6].mxu0  ;;  %381 = vmax.xlane.f32.xlu1 %v380_v6 }
 0x306   :  { %v2676_v8 = vpop.f32.mrb[7].mxu0  ;;  %v383_v9 = vsel %vm379_vm4, %v374_v3, -inf }
 0x307   :  { %384 = vmax.xlane.f32.xlu0 %v383_v9 }
 0x392   :  { %v382_v10 = vpop.xlane.xlu1 %381 }
 0x393   :  { %v386_v11 = vsub.f32 %v328_v63, %v382_v10 }
 0x394   :  { %v385_v12 = vpop.xlane.xlu0 %384 }
 0x395   :  { %v388_v13 = vmul.f32 1.442695, %v386_v11  ;;  %v387_v14 = vsub.f32 %v374_v3, %v385_v12 }
 0x397   :  { %2946 = vpow2.f32 %v388_v13  ;;  %v390_v15 = vmul.f32 1.442695, %v387_v14 }
 0x399   :  { %2948 = vpow2.f32 %v390_v15 }
 0x3a1   :  { %v2947_v17 = vpop.eup %2946 }
 0x3a2   :  { %v392_v18 = vsel %vm379_vm4, %v2947_v17, 0.0 }
 0x3a3   :  { %v2949_v19 = vpop.eup %2948  ;;  %393 = vadd.xlane.f32.xlu1 %v392_v18 }
 0x3a4   :  { %v395_v20 = vsel %vm379_vm4, %v2949_v19, 0.0 }
 0x3a5   :  { %396 = vadd.xlane.f32.xlu0 %v395_v20 }
 0x430   :  { %v394_v21 = vpop.xlane.xlu1 %393 }
 0x431   :  { %2950 = vrcp.f32 %v394_v21 }
 0x432   :  { %v397_v22 = vpop.xlane.xlu0 %396 }
 0x433   :  { %2952 = vrcp.f32 %v397_v22 }
 0x43b   :  { %v2951_v23 = vpop.eup %2950 }
 0x43c   :  { %v400_v24 = vmul.f32 %v2951_v23, %v2947_v17 }
 0x43d   :  { %v2953_v25 = vpop.eup %2952 }
 0x43e   :  { %v401_v27 = vmul.f32 %v2953_v25, %v2949_v19  ;;  %v402_v28 = vpack.c.bf16 %v400_v24, %v400_v24 }
 0x440   :  { %2680 = vmatmul.mubr.msk.bf16.vlgmr.msra.gmra.mrb[12].mxu1 %vm379_vm4, %v402_v28  ;;  %v403_v30 = vpack.c.bf16 %v401_v27, %v401_v27 }
 0x441   :  { %2690 = vmatpush3.bf16.msra.mxu1 %v2908_v26  ;;  %2693 = vmatprep.mubr.msk.bf16.mxu1 %vm3019_vm1, %v3018_v16 }
 0x442   :  { %2686 = vmatmul.mubr.msk.bf16.vlgmr.msra.gmra.mrb[8].mxu0 %vm379_vm4, %v403_v30  ;;  %2691 = vmatprep.subr.bf16.mxu1 %v3018_v16 }
 0x443   :  { %2698 = vmatpush3.bf16.msra.mxu0 %v2909_v29  ;;  %2701 = vmatprep.mubr.msk.bf16.mxu0 %vm3019_vm1, %v3018_v16 }
 0x444   :  { %2699 = vmatprep.subr.bf16.mxu0 %v3018_v16 }
 0x445   :  { %2692 = vmatpush3.bf16.msra.mxu1 %v2910_v31 }
 0x446   :  { %2705 = vmatprep.subr.bf16.mxu1 %v3018_v16 }
 0x447   :  { %2700 = vmatpush3.bf16.msra.mxu0 %v2911_v32 }
 0x448   :  { %2694 = vmatmul.mubr.msk.bf16.vlgmr.msra.gmra.mrb[16].mxu1 %vm61_vm0, %v3155_v36  ;;  %2713 = vmatprep.subr.bf16.mxu0 %v3018_v16 }
 0x449   :  { %2706 = vmatpush3.bf16.msra.mxu1 %v2912_v35  ;;  %2709 = vmatprep.mubr.msk.bf16.mxu1 %vm3019_vm1, %v3018_v16 }
 0x44a   :  { %2702 = vmatmul.mubr.msk.bf16.vlgmr.msra.gmra.mrb[12].mxu0 %vm61_vm0, %v3155_v36  ;;  %2707 = vmatprep.subr.bf16.mxu1 %v3018_v16 }
 0x44b   :  { %2715 = vmatprep.mubr.msk.bf16.mxu0 %vm3019_vm1, %v3018_v16 }
 0x44d   :  { %2708 = vmatpush3.bf16.msra.mxu1 %v2913_v37  ;;  %v2915_v37 = vld [vmem:[%s3581_s7 + $0x8] sm:$0xff]  }
 0x44e   :  { %2719 = vmatprep.subr.bf16.mxu1 %v3018_v16 }
 0x450   :  { %2710 = vmatmul.mubr.msk.bf16.vlgmr.msra.gmra.mrb[20].mxu1 %vm61_vm0, %v3155_v36 }
 0x451   :  { %2721 = vmatprep.mubr.msk.bf16.mxu1 %vm3019_vm1, %v3018_v16 }
 0x513   :  { %v3246_v38 = vpop.f32.mrb[12].mxu1 }
 0x514   :  { %v2681_v39 = vpop.f32.mrb[13].mxu1 }
 0x515   :  { %v448_v40 = vpop.f32.mrb[14].mxu1  ;;  %v3248_v41 = vpop.f32.mrb[8].mxu0 }
 0x516   :  { %v497_v42 = vpack.c.bf16 %v3248_v41, %v3246_v38  ;;  %v2682_v43 = vpop.f32.mrb[15].mxu1  ;;  %v2687_v44 = vpop.f32.mrb[9].mxu0 }
 0x517   :  { %v494_v45 = vpop.f32.mrb[10].mxu0  ;;  %v2914_v43 = vld [vmem:[%s3581_s7] sm:$0xff]  }
 0x518   :  { %v2688_v46 = vpop.f32.mrb[11].mxu0 }
 0x51b   :  { %v551_v47 = vpop.f32.mrb[16].mxu1 }
 0x51c   :  { %v2695_v48 = vpop.f32.mrb[17].mxu1  ;;  %v674_v0 = vpack.c.bf16 %v551_v47, %v551_v47 }
 0x51d   :  { %v554_v49 = vpop.f32.mrb[18].mxu1  ;;  %v609_v36 = vpop.f32.mrb[12].mxu0 }
 0x51e   :  { %v676_v50 = vpack.c.bf16 %v609_v36, %v609_v36  ;;  %v2696_v51 = vpop.f32.mrb[19].mxu1  ;;  %v2703_v52 = vpop.f32.mrb[13].mxu0  ;;  %v675_v3 = vpack.c.bf16 %v554_v49, %v554_v49 }
 0x51f   :  { %v612_v53 = vpop.f32.mrb[14].mxu0 }
 0x520   :  { %v684_v54 = vsel %vm286_vm2, %v676_v50, 0  ;;  %v677_v55 = vpack.c.bf16 %v612_v53, %v612_v53  ;;  %v2704_v56 = vpop.f32.mrb[15].mxu0 }
 0x521   :  { %2714 = vmatpush3.bf16.xpose.msra.mxu0 %v684_v54 }
 0x522   :  { %v730_v57 = vsel %vm286_vm2, %v677_v55, 0  ;;  %2725 = vmatprep.subr.bf16.mxu0 %v3018_v16 }
 0x523   :  { %v667_v58 = vpop.f32.mrb[20].mxu1  ;;  %2720 = vmatpush3.bf16.xpose.msra.mxu1 %v730_v57 }
 0x524   :  { %v678_v59 = vpack.c.bf16 %v667_v58, %v667_v58  ;;  %v2711_v61 = vpop.f32.mrb[21].mxu1  ;;  %2731 = vmatprep.subr.bf16.mxu1 %v3018_v16 }
 0x525   :  { %v670_v63 = vpop.f32.mrb[22].mxu1 }
 0x526   :  { %v679_v1 = vpack.c.bf16 %v670_v63, %v670_v63  ;;  %v2712_v2 = vpop.f32.mrb[23].mxu1  ;;  %v800_v4 = vsel %vm407_vm3, %v678_v59, 0 }
 0x528   :  { %2716 = vmatmul.mubr.msk.bf16.vlgmr.msra.gmra.mrb[16].mxu0 %vm286_vm2, %v674_v0  ;;  %v846_v5 = vsel %vm407_vm3, %v679_v1, 0 }
 0x529   :  { %2726 = vmatpush3.bf16.msra.mxu0 %v800_v4  ;;  %2727 = vmatprep.mubr.msk.bf16.mxu0 %vm3019_vm1, %v3018_v16 }
 0x52a   :  { %2722 = vmatmul.mubr.msk.bf16.vlgmr.msra.gmra.mrb[24].mxu1 %vm286_vm2, %v675_v3  ;;  %2737 = vmatprep.subr.bf16.mxu0 %v3018_v16 }
 0x52b   :  { %2732 = vmatpush3.bf16.msra.mxu1 %v846_v5  ;;  %2733 = vmatprep.mubr.msk.bf16.mxu1 %vm3019_vm1, %v3018_v16 }
 0x52c   :  { %2743 = vmatprep.subr.bf16.mxu1 %v3018_v16 }
 0x5fb   :  { %v720_v6 = vpop.f32.mrb[16].mxu0 }
 0x5fc   :  { %v721_v7 = vadd.f32 %v720_v6, %v3191_v60  ;;  %v2717_v8 = vpop.f32.mrb[17].mxu0 }
 0x5fd   :  { %v723_v9 = vpop.f32.mrb[18].mxu0  ;;  %v766_v10 = vpop.f32.mrb[24].mxu1 }
 0x5fe   :  { %v767_v11 = vadd.f32 %v766_v10, %v3196_v62  ;;  %v2718_v12 = vpop.f32.mrb[19].mxu0  ;;  %v2723_v13 = vpop.f32.mrb[25].mxu1  ;;  %v772_v14 = vsel %vm379_vm4, %v721_v7, -inf }
 0x5ff   :  { %773 = vmax.xlane.f32.xlu0 %v772_v14  ;;  %v769_v15 = vpop.f32.mrb[26].mxu1  ;;  %v2918_v12 = vld [vmem:[%s3586_s12] sm:$0xff]   ;;  %v2919_v13 = vld [vmem:[%s3586_s12 + $0x8] sm:$0xff]  }
 0x600   :  { %v2724_v17 = vpop.f32.mrb[27].mxu1  ;;  %v775_v18 = vsel %vm379_vm4, %v767_v11, -inf }
 0x601   :  { %776 = vmax.xlane.f32.xlu1 %v775_v18 }
 0x68c   :  { %v774_v19 = vpop.xlane.xlu0 %773 }
 0x68d   :  { %v778_v20 = vsub.f32 %v721_v7, %v774_v19 }
 0x68e   :  { %v777_v21 = vpop.xlane.xlu1 %776 }
 0x68f   :  { %v780_v22 = vmul.f32 1.442695, %v778_v20  ;;  %v779_v23 = vsub.f32 %v767_v11, %v777_v21  ;;  %v2917_v11 = vld [vmem:[%s3584_s10 + $0x8] sm:$0xff]  }
 0x691   :  { %2954 = vpow2.f32 %v780_v22  ;;  %v782_v24 = vmul.f32 1.442695, %v779_v23  ;;  %v2445_v22 = vld [vmem:[%s3582_s8] ss:$0 sm:$0xff] }
 0x693   :  { %2956 = vpow2.f32 %v782_v24 }
 0x69b   :  { %v2955_v25 = vpop.eup %2954 }
 0x69c   :  { %v784_v26 = vsel %vm379_vm4, %v2955_v25, 0.0 }
 0x69d   :  { %v2957_v27 = vpop.eup %2956  ;;  %785 = vadd.xlane.f32.xlu0 %v784_v26 }
 0x69e   :  { %v787_v28 = vsel %vm379_vm4, %v2957_v27, 0.0 }
 0x69f   :  { %788 = vadd.xlane.f32.xlu1 %v787_v28 }
 0x72a   :  { %v786_v29 = vpop.xlane.xlu0 %785 }
 0x72b   :  { %2958 = vrcp.f32 %v786_v29 }
 0x72c   :  { %v789_v30 = vpop.xlane.xlu1 %788 }
 0x72d   :  { %2960 = vrcp.f32 %v789_v30 }
 0x735   :  { %v2959_v31 = vpop.eup %2958 }
 0x736   :  { %v792_v32 = vmul.f32 %v2959_v31, %v2955_v25 }
 0x737   :  { %v2961_v35 = vpop.eup %2960 }
 0x738   :  { %v793_v39 = vmul.f32 %v2961_v35, %v2957_v27  ;;  %v794_v40 = vpack.c.bf16 %v792_v32, %v792_v32  ;;  %v2446_v27 = vld [vmem:[%s3583_s9] ss:$0 sm:$0xff]  ;;  %v2920_v32 = vld [vmem:[%s3586_s12 + $0x10] sm:$0xff]   ;;  %v2921_v35 = vld [vmem:[%s3586_s12 + $0x18] sm:$0xff]  }
 0x73a   :  { %2728 = vmatmul.mubr.msk.bf16.vlgmr.msra.gmra.mrb[20].mxu0 %vm379_vm4, %v794_v40  ;;  %v795_v44 = vpack.c.bf16 %v793_v39, %v793_v39 }
 0x73b   :  { %2738 = vmatpush3.bf16.msra.mxu0 %v2915_v37  ;;  %2739 = vmatprep.mubr.msk.bf16.mxu0 %vm3019_vm1, %v3018_v16  ;;  %v2447_v37 = vld [vmem:[%s3585_s11] ss:$0 sm:$0xff] }
 0x73c   :  { %2734 = vmatmul.mubr.msk.bf16.vlgmr.msra.gmra.mrb[28].mxu1 %vm379_vm4, %v795_v44  ;;  %2749 = vmatprep.subr.bf16.mxu0 %v3018_v16 }
 0x73d   :  { %2744 = vmatpush3.bf16.msra.mxu1 %v2914_v43  ;;  %2745 = vmatprep.mubr.msk.bf16.mxu1 %vm3019_vm1, %v3018_v16 }
 0x73e   :  { %2757 = vmatprep.subr.bf16.mxu1 %v3018_v16 }
 0x744   :  { %2746 = vmatmul.mubr.msk.bf16.vlgmr.msra.gmra.mrb[32].mxu1 %vm286_vm2, %v497_v42 }
 0x745   :  { %2765 = vmatprep.mubr.msk.bf16.mxu1 %vm3019_vm1, %v3018_v16  ;;  %2758 = vmatpush3.bf16.msra.mxu1 %v2918_v12 }
 0x746   :  { %2759 = vmatprep.subr.bf16.mxu1 %v3018_v16 }
 0x749   :  { %2760 = vmatpush3.bf16.msra.mxu1 %v2919_v13 }
 0x74a   :  { %2761 = vmatprep.subr.bf16.mxu1 %v3018_v16 }
 0x74d   :  { %2762 = vmatpush3.bf16.msra.mxu1 %v2920_v32 }
 0x74e   :  { %2763 = vmatprep.subr.bf16.mxu1 %v3018_v16 }
 0x751   :  { %2764 = vmatpush3.bf16.msra.mxu1 %v2921_v35 }
 0x752   :  { %2785 = vmatprep.subr.bf16.mxu1 %v3018_v16 }
 0x80d   :  { %v836_v45 = vpop.f32.mrb[20].mxu0 }
 0x80e   :  { %v2729_v46 = vpop.f32.mrb[21].mxu0 }
 0x80f   :  { %v839_v47 = vpop.f32.mrb[22].mxu0  ;;  %v882_v48 = vpop.f32.mrb[28].mxu1 }
 0x810   :  { %v888_v49 = vpack.c.bf16 %v882_v48, %v836_v45  ;;  %v2730_v36 = vpop.f32.mrb[23].mxu0  ;;  %v2735_v50 = vpop.f32.mrb[29].mxu1 }
 0x811   :  { %v885_v51 = vpop.f32.mrb[30].mxu1  ;;  %v2451_v36 = vld [vmem:[%s3587_s13] ss:$0 sm:$0xff] }
 0x812   :  { %v2736_v52 = vpop.f32.mrb[31].mxu1  ;;  %2740 = vmatmul.mubr.msk.bf16.vlgmr.msra.gmra.mrb[24].mxu0 %vm286_vm2, %v888_v49 }
 0x813   :  { %2753 = vmatprep.mubr.msk.bf16.mxu0 %vm3019_vm1, %v3018_v16 }
 0x817   :  { %v985_v38 = vpop.f32.mrb[32].mxu1 }
 0x818   :  { %v2747_v41 = vpop.f32.mrb[33].mxu1 }
 0x819   :  { %v988_v42 = vpop.f32.mrb[34].mxu1 }
 0x81a   :  { %v2748_v53 = vpop.f32.mrb[35].mxu1 }
 0x8e5   :  { %v935_v54 = vpop.f32.mrb[24].mxu0 }
 0x8e6   :  { %v986_v55 = vadd.f32 %v985_v38, %v935_v54  ;;  %v2741_v56 = vpop.f32.mrb[25].mxu0 }
 0x8e7   :  { %v938_v57 = vpop.f32.mrb[26].mxu0 }
 0x8e8   :  { %v989_v58 = vadd.f32 %v988_v42, %v938_v57  ;;  %v2742_v59 = vpop.f32.mrb[27].mxu0  ;;  %v992_v61 = vadd.f32 %v986_v55, %v3146_v33 }
 0x8ea   :  { %v996_v63 = vsel %vm61_vm0, %v992_v61, 0.0  ;;  %v993_v0 = vadd.f32 %v989_v58, %v3148_v34  ;;  %v2916_v34 = vld [vmem:[%s3584_s10] sm:$0xff]  }
 0x8eb   :  { %997 = vadd.xlane.f32.xlu0 %v996_v63  ;;  %2750 = vmatpush3.bf16.msra.mxu0 %v2916_v34 }
 0x8ec   :  { %v999_v1 = vsel %vm61_vm0, %v993_v0, 0.0  ;;  %2751 = vmatprep.subr.bf16.mxu0 %v3018_v16 }
 0x8ed   :  { %1000 = vadd.xlane.f32.xlu1 %v999_v1 }
 0x8ef   :  { %2752 = vmatpush3.bf16.msra.mxu0 %v2917_v11 }
 0x8f0   :  { %2769 = vmatprep.subr.bf16.mxu0 %v3018_v16 }
 0x978   :  { %v998_v2 = vpop.xlane.xlu0 %997 }
 0x979   :  { %v1002_v3 = vmul.f32 0.03125, %v998_v2 }
 0x97a   :  { %v1001_v4 = vpop.xlane.xlu1 %1000 }
 0x97b   :  { %v1004_v5 = vsub.f32 %v992_v61, %v1002_v3  ;;  %v1003_v6 = vmul.f32 0.03125, %v1001_v4 }
 0x97d   :  { %v1005_v7 = vsub.f32 %v993_v0, %v1003_v6  ;;  %v1006_v8 = vmul.f32 %v1004_v5, %v1004_v5  ;;  %v2923_v6 = vld [vmem:[%s3580_s6 + $0x20] sm:$0xff]  }
 0x97f   :  { %v1008_v9 = vsel %vm61_vm0, %v1006_v8, 0.0  ;;  %v1007_v10 = vmul.f32 %v1005_v7, %v1005_v7  ;;  %v2925_v8 = vld [vmem:[%s3580_s6 + $0x28] sm:$0xff]  }
 0x980   :  { %1009 = vadd.xlane.f32.xlu0 %v1008_v9 }
 0x981   :  { %v1011_v33 = vsel %vm61_vm0, %v1007_v10, 0.0 }
 0x982   :  { %1012 = vadd.xlane.f32.xlu1 %v1011_v33 }
 0xa0d   :  { %v1010_v14 = vpop.xlane.xlu0 %1009 }
 0xa0e   :  { %v1014_v15 = vmul.f32 0.03125, %v1010_v14  ;;  %v2457_v14 = vld [vmem:[%s3588_s14] ss:$0 sm:$0xff] }
 0xa0f   :  { %v1013_v17 = vpop.xlane.xlu1 %1012 }
 0xa10   :  { %v1016_v18 = vadd.f32 1e-06, %v1014_v15  ;;  %v1015_v19 = vmul.f32 0.03125, %v1013_v17 }
 0xa12   :  { %2962 = vrsqrt.f32 %v1016_v18  ;;  %v1017_v20 = vadd.f32 1e-06, %v1015_v19 }
 0xa14   :  { %2964 = vrsqrt.f32 %v1017_v20  ;;  %v2458_v20 = vld [vmem:[%s3589_s15] ss:$0 sm:$0xff] }
 0xa1c   :  { %v2963_v21 = vpop.eup %2962 }
 0xa1d   :  { %v1020_v23 = vmul.f32 %v2963_v21, %v1004_v5  ;;  %v2922_v5 = vld [vmem:[%s3578_s4 + $0x20] sm:$0xff]  }
 0xa1e   :  { %v2965_v24 = vpop.eup %2964 }
 0xa1f   :  { %v1028_v25 = vmul.f32 %v2445_v22, %v1020_v23  ;;  %v1021_v26 = vmul.f32 %v2965_v24, %v1005_v7  ;;  %v2924_v7 = vld [vmem:[%s3578_s4 + $0x28] sm:$0xff]   ;;  %v2926_v24 = vld [vmem:[%s3579_s5 + $0x20] sm:$0xff]  }
 0xa21   :  { %v1029_v28 = vmul.f32 %v2445_v22, %v1021_v26  ;;  %v1036_v29 = vadd.f32 %v2446_v27, %v1028_v25  ;;  %v2927_v26 = vld [vmem:[%s3579_s5 + $0x28] sm:$0xff]  }
 0xa23   :  { %v1037_v30 = vadd.f32 %v2446_v27, %v1029_v28 }
 0xa25   :  { %v1038_v31 = vpack.c.bf16 %v1037_v30, %v1036_v29 }
 0xa27   :  { %2754 = vmatmul.mubr.msk.bf16.vlgmr.msra.gmra.mrb[28].mxu0 %vm61_vm0, %v1038_v31 }
 0xa28   :  { %2773 = vmatprep.mubr.msk.bf16.mxu0 %vm3019_vm1, %v3018_v16  ;;  %2770 = vmatpush3.bf16.msra.mxu0 %v2922_v5 }
 0xa29   :  { %2771 = vmatprep.subr.bf16.mxu0 %v3018_v16 }
 0xa2c   :  { %2772 = vmatpush3.bf16.msra.mxu0 %v2924_v7 }
 0xa2d   :  { %2777 = vmatprep.subr.bf16.mxu0 %v3018_v16 }
 0xafa   :  { %v1099_v39 = vpop.f32.mrb[28].mxu0 }
 0xafb   :  { %v1100_v40 = vadd.f32 %v2447_v37, %v1099_v39  ;;  %v2755_v43 = vpop.f32.mrb[29].mxu0 }
 0xafc   :  { %v1102_v44 = vpop.f32.mrb[30].mxu0 }
 0xafd   :  { %v1103_v45 = vadd.f32 %v2447_v37, %v1102_v44  ;;  %v2756_v46 = vpop.f32.mrb[31].mxu0  ;;  %v1106_v47 = vmax.f32 %v1100_v40, 0.0 }
 0xaff   :  { %v1107_v48 = vmax.f32 %v1103_v45, 0.0 }
 0xb01   :  { %v1108_v49 = vpack.c.bf16 %v1107_v48, %v1106_v47 }
 0xb03   :  { %2766 = vmatmul.mubr.msk.bf16.vlgmr.msra.gmra.mrb[36].mxu1 %vm1148_vm5, %v1108_v49 }
 0xb04   :  { %2789 = vmatprep.mubr.msk.bf16.mxu1 %vm3019_vm1, %v3018_v16  ;;  %2786 = vmatpush3.bf16.msra.mxu1 %v2923_v6 }
 0xb05   :  { %2787 = vmatprep.subr.bf16.mxu1 %v3018_v16 }
 0xb08   :  { %2788 = vmatpush3.bf16.msra.mxu1 %v2925_v8 }
 0xb09   :  { %2799 = vmatprep.subr.bf16.mxu1 %v3018_v16 }
 0xbd6   :  { %v1186_v50 = vpop.f32.mrb[36].mxu1 }
 0xbd7   :  { %v1187_v51 = vadd.f32 %v2451_v36, %v1186_v50  ;;  %v2767_v52 = vpop.f32.mrb[37].mxu1 }
 0xbd8   :  { %v1189_v38 = vpop.f32.mrb[38].mxu1 }
 0xbd9   :  { %v1190_v41 = vadd.f32 %v2451_v36, %v1189_v38  ;;  %v2768_v42 = vpop.f32.mrb[39].mxu1  ;;  %v1193_v53 = vadd.f32 %v1187_v51, %v1036_v29 }
 0xbdb   :  { %v1197_v54 = vsel %vm61_vm0, %v1193_v53, 0.0  ;;  %v1194_v55 = vadd.f32 %v1190_v41, %v1037_v30 }
 0xbdc   :  { %1198 = vadd.xlane.f32.xlu0 %v1197_v54 }
 0xbdd   :  { %v1200_v56 = vsel %vm61_vm0, %v1194_v55, 0.0 }
 0xbde   :  { %1201 = vadd.xlane.f32.xlu1 %v1200_v56 }
 0xc69   :  { %v1199_v57 = vpop.xlane.xlu0 %1198 }
 0xc6a   :  { %v1203_v58 = vmul.f32 0.03125, %v1199_v57 }
 0xc6b   :  { %v1202_v59 = vpop.xlane.xlu1 %1201 }
 0xc6c   :  { %v1205_v61 = vsub.f32 %v1193_v53, %v1203_v58  ;;  %v1204_v63 = vmul.f32 0.03125, %v1202_v59 }
 0xc6e   :  { %v1206_v0 = vsub.f32 %v1194_v55, %v1204_v63  ;;  %v1207_v1 = vmul.f32 %v1205_v61, %v1205_v61 }
 0xc70   :  { %v1209_v2 = vsel %vm61_vm0, %v1207_v1, 0.0  ;;  %v1208_v3 = vmul.f32 %v1206_v0, %v1206_v0 }
 0xc71   :  { %1210 = vadd.xlane.f32.xlu0 %v1209_v2 }
 0xc72   :  { %v1212_v4 = vsel %vm61_vm0, %v1208_v3, 0.0 }
 0xc73   :  { %1213 = vadd.xlane.f32.xlu1 %v1212_v4 }
 0xcfe   :  { %v1211_v9 = vpop.xlane.xlu0 %1210 }
 0xcff   :  { %v1215_v10 = vmul.f32 0.03125, %v1211_v9 }
 0xd00   :  { %v1214_v33 = vpop.xlane.xlu1 %1213 }
 0xd01   :  { %v1217_v34 = vadd.f32 1e-06, %v1215_v10  ;;  %v1216_v11 = vmul.f32 0.03125, %v1214_v33 }
 0xd03   :  { %2966 = vrsqrt.f32 %v1217_v34  ;;  %v1218_v12 = vadd.f32 1e-06, %v1216_v11 }
 0xd05   :  { %2968 = vrsqrt.f32 %v1218_v12 }
 0xd0d   :  { %v2967_v13 = vpop.eup %2966 }
 0xd0e   :  { %v1221_v15 = vmul.f32 %v2967_v13, %v1205_v61 }
 0xd0f   :  { %v2969_v17 = vpop.eup %2968 }
 0xd10   :  { %v1229_v18 = vmul.f32 %v2457_v14, %v1221_v15  ;;  %v1222_v19 = vmul.f32 %v2969_v17, %v1206_v0 }
 0xd12   :  { %v1230_v21 = vmul.f32 %v2457_v14, %v1222_v19  ;;  %v3369_v22 = vadd.f32 %v2458_v20, %v1229_v18  ;;  %v2928_v14 = vld [vmem:[%s3578_s4 + $0x30] sm:$0xff]  }
 0xd13   :  { %v2929_v18 = vld [vmem:[%s3579_s5 + $0x30] sm:$0xff]  }
 0xd14   :  { %v3371_v23 = vadd.f32 %v2458_v20, %v1230_v21  ;;  %v2930_v20 = vld [vmem:[%s3578_s4 + $0x38] sm:$0xff]  }
 0xd15   :  { %v2931_v21 = vld [vmem:[%s3579_s5 + $0x38] sm:$0xff]  }
 0xd16   :  { %v3378_v25 = vpack.c.bf16 %v3371_v23, %v3369_v22 }
 0xd18   :  { %2774 = vmatmul.mubr.msk.bf16.vlgmr.msra.gmra.mrb[32].mxu0 %vm61_vm0, %v3378_v25  ;;  %2790 = vmatmul.mubr.msk.bf16.vlgmr.msra.gmra.mrb[40].mxu1 %vm61_vm0, %v3378_v25 }
 0xd19   :  { %2778 = vmatpush3.bf16.msra.mxu0 %v2926_v24  ;;  %2781 = vmatprep.mubr.msk.bf16.mxu0 %vm3019_vm1, %v3018_v16  ;;  %v2932_v24 = vld [vmem:[%s3580_s6 + $0x30] sm:$0xff]  }
 0xd1a   :  { %2779 = vmatprep.subr.bf16.mxu0 %v3018_v16  ;;  %2801 = vmatprep.mubr.msk.bf16.mxu1 %vm3019_vm1, %v3018_v16 }
 0xd1d   :  { %2780 = vmatpush3.bf16.msra.mxu0 %v2927_v26  ;;  %v2933_v26 = vld [vmem:[%s3580_s6 + $0x38] sm:$0xff]   ;;  %s3020_s6 = smov [#allocation2]  }
 0xd1e   :  { %2793 = vmatprep.subr.bf16.mxu0 %v3018_v16  ;;  %s2388_s21 = sshll.u32 %s3020_s6, 4  ;;  %s2389_s21 = int_to_ptr.vmem [resolvable:$true] %s2388_s21 }
 0xd1f   :  { %s2994_s22 = scalar_lea.vmem %s2389_s21, 256  ;;  %p2999_p1 = scmp.lt.s32.totalorder %s2389_s21, %s2389_s21 }
 0xd20   :  { %2782 = vmatmul.mubr.msk.bf16.vlgmr.msra.gmra.mrb[36].mxu0 %vm61_vm0, %v3378_v25  ;;  %p2995_p0 = scmp.ne.s32.totalorder %s2389_s21, %s2994_s22  ;;  %p3000_p2 = scmp.lt.s32.totalorder %s2994_s22, %s2994_s22 }
 0xd21   :  { %2795 = vmatprep.mubr.msk.bf16.mxu0 %vm3019_vm1, %v3018_v16 }
 0xd22   :  { %p3001_p3 = por %p3000_p2, %p2999_p1 }
 0xd24   :  { %p3002_p4 = pnand %p3001_p3, %p2995_p0 }
 0xdeb   :  { %v1294_v27 = vpop.f32.mrb[32].mxu0  ;;  %v1410_v28 = vpop.f32.mrb[40].mxu1 }
 0xdec   :  { %v2775_v29 = vpop.f32.mrb[33].mxu0  ;;  %v2791_v30 = vpop.f32.mrb[41].mxu1  ;;  %v1421_v49 = vpack.c.bf16 %v1410_v28, %v1410_v28  ;;  %v1417_v36 = vpack.c.bf16 %v1294_v27, %v1294_v27 }
 0xded   :  { %v1297_v31 = vpop.f32.mrb[34].mxu0  ;;  %v1413_v32 = vpop.f32.mrb[42].mxu1 }
 0xdee   :  { %v2776_v35 = vpop.f32.mrb[35].mxu0  ;;  %v2792_v37 = vpop.f32.mrb[43].mxu1  ;;  %v1422_v50 = vpack.c.bf16 %v1413_v32, %v1413_v32  ;;  %v1543_v51 = vsel %vm407_vm3, %v1421_v49, 0  ;;  %v1418_v52 = vpack.c.bf16 %v1297_v31, %v1297_v31 }
 0xdf0   :  { %v1589_v38 = vsel %vm407_vm3, %v1422_v50, 0 }
 0xdf3   :  { %v1352_v39 = vpop.f32.mrb[36].mxu0 }
 0xdf4   :  { %v1419_v40 = vpack.c.bf16 %v1352_v39, %v1352_v39  ;;  %v2783_v43 = vpop.f32.mrb[37].mxu0 }
 0xdf5   :  { %v1355_v44 = vpop.f32.mrb[38].mxu0 }
 0xdf6   :  { %v1427_v45 = vsel %vm286_vm2, %v1419_v40, 0  ;;  %v1420_v46 = vpack.c.bf16 %v1355_v44, %v1355_v44  ;;  %v2784_v47 = vpop.f32.mrb[39].mxu0 }
 0xdf7   :  { %2794 = vmatpush3.bf16.xpose.msra.mxu0 %v1427_v45 }
 0xdf8   :  { %v1473_v48 = vsel %vm286_vm2, %v1420_v46, 0  ;;  %2805 = vmatprep.subr.bf16.mxu0 %v3018_v16 }
 0xdf9   :  { %2800 = vmatpush3.bf16.xpose.msra.mxu1 %v1473_v48 }
 0xdfa   :  { %2811 = vmatprep.subr.bf16.mxu1 %v3018_v16 }
 0xdfe   :  { %2796 = vmatmul.mubr.msk.bf16.vlgmr.msra.gmra.mrb[40].mxu0 %vm286_vm2, %v1417_v36 }
 0xdff   :  { %2806 = vmatpush3.bf16.msra.mxu0 %v1543_v51  ;;  %2807 = vmatprep.mubr.msk.bf16.mxu0 %vm3019_vm1, %v3018_v16 }
 0xe00   :  { %2802 = vmatmul.mubr.msk.bf16.vlgmr.msra.gmra.mrb[44].mxu1 %vm286_vm2, %v1418_v52  ;;  %2817 = vmatprep.subr.bf16.mxu0 %v3018_v16 }
 0xe01   :  { %2812 = vmatpush3.bf16.msra.mxu1 %v1589_v38  ;;  %2813 = vmatprep.mubr.msk.bf16.mxu1 %vm3019_vm1, %v3018_v16 }
 0xe02   :  { %2825 = vmatprep.subr.bf16.mxu1 %v3018_v16 }
 0xed1   :  { %v1463_v41 = vpop.f32.mrb[40].mxu0 }
 0xed2   :  { %v1464_v42 = vadd.f32 %v1463_v41, %v3191_v60  ;;  %v2797_v53 = vpop.f32.mrb[41].mxu0 }
 0xed3   :  { %v1466_v54 = vpop.f32.mrb[42].mxu0  ;;  %v1509_v55 = vpop.f32.mrb[44].mxu1 }
 0xed4   :  { %v1510_v56 = vadd.f32 %v1509_v55, %v3196_v62  ;;  %v2798_v57 = vpop.f32.mrb[43].mxu0  ;;  %v2803_v58 = vpop.f32.mrb[45].mxu1  ;;  %v1515_v59 = vsel %vm379_vm4, %v1464_v42, -inf }
 0xed5   :  { %1516 = vmax.xlane.f32.xlu1 %v1515_v59  ;;  %v1512_v61 = vpop.f32.mrb[46].mxu1 }
 0xed6   :  { %v2804_v63 = vpop.f32.mrb[47].mxu1  ;;  %v1518_v0 = vsel %vm379_vm4, %v1510_v56, -inf }
 0xed7   :  { %1519 = vmax.xlane.f32.xlu0 %v1518_v0 }
 0xf62   :  { %v1517_v1 = vpop.xlane.xlu1 %1516 }
 0xf63   :  { %v1521_v2 = vsub.f32 %v1464_v42, %v1517_v1 }
 0xf64   :  { %v1520_v3 = vpop.xlane.xlu0 %1519 }
 0xf65   :  { %v1523_v4 = vmul.f32 1.442695, %v1521_v2  ;;  %v1522_v5 = vsub.f32 %v1510_v56, %v1520_v3 }
 0xf67   :  { %2970 = vpow2.f32 %v1523_v4  ;;  %v1525_v6 = vmul.f32 1.442695, %v1522_v5 }
 0xf69   :  { %2972 = vpow2.f32 %v1525_v6 }
 0xf71   :  { %v2971_v7 = vpop.eup %2970 }
 0xf72   :  { %v1527_v8 = vsel %vm379_vm4, %v2971_v7, 0.0 }
 0xf73   :  { %v2973_v9 = vpop.eup %2972  ;;  %1528 = vadd.xlane.f32.xlu1 %v1527_v8 }
 0xf74   :  { %v1530_v10 = vsel %vm379_vm4, %v2973_v9, 0.0 }
 0xf75   :  { %1531 = vadd.xlane.f32.xlu0 %v1530_v10 }
0x1000   :  { %v1529_v33 = vpop.xlane.xlu1 %1528 }
0x1001   :  { %2974 = vrcp.f32 %v1529_v33 }
0x1002   :  { %v1532_v34 = vpop.xlane.xlu0 %1531 }
0x1003   :  { %2976 = vrcp.f32 %v1532_v34 }
0x100b   :  { %v2975_v11 = vpop.eup %2974 }
0x100c   :  { %v1535_v12 = vmul.f32 %v2975_v11, %v2971_v7 }
0x100d   :  { %v2977_v13 = vpop.eup %2976 }
0x100e   :  { %v1536_v15 = vmul.f32 %v2977_v13, %v2973_v9  ;;  %v1537_v17 = vpack.c.bf16 %v1535_v12, %v1535_v12 }
0x1010   :  { %2808 = vmatmul.mubr.msk.bf16.vlgmr.msra.gmra.mrb[44].mxu0 %vm379_vm4, %v1537_v17  ;;  %v1538_v19 = vpack.c.bf16 %v1536_v15, %v1536_v15 }
0x1011   :  { %2818 = vmatpush3.bf16.msra.mxu0 %v2928_v14  ;;  %2821 = vmatprep.mubr.msk.bf16.mxu0 %vm3019_vm1, %v3018_v16 }
0x1012   :  { %2814 = vmatmul.mubr.msk.bf16.vlgmr.msra.gmra.mrb[48].mxu1 %vm379_vm4, %v1538_v19  ;;  %2819 = vmatprep.subr.bf16.mxu0 %v3018_v16 }
0x1013   :  { %2826 = vmatpush3.bf16.msra.mxu1 %v2929_v18  ;;  %2829 = vmatprep.mubr.msk.bf16.mxu1 %vm3019_vm1, %v3018_v16 }
0x1014   :  { %2827 = vmatprep.subr.bf16.mxu1 %v3018_v16 }
0x1015   :  { %2820 = vmatpush3.bf16.msra.mxu0 %v2930_v20 }
0x1016   :  { %2833 = vmatprep.subr.bf16.mxu0 %v3018_v16 }
0x1017   :  { %2828 = vmatpush3.bf16.msra.mxu1 %v2931_v21  ;;  %v2935_v21 = vld [vmem:[%s3581_s7 + $0x18] sm:$0xff]  }
0x1018   :  { %2822 = vmatmul.mubr.msk.bf16.vlgmr.msra.gmra.mrb[48].mxu0 %vm61_vm0, %v3378_v25  ;;  %2841 = vmatprep.subr.bf16.mxu1 %v3018_v16 }
0x1019   :  { %2834 = vmatpush3.bf16.msra.mxu0 %v2932_v24  ;;  %2837 = vmatprep.mubr.msk.bf16.mxu0 %vm3019_vm1, %v3018_v16 }
0x101a   :  { %2830 = vmatmul.mubr.msk.bf16.vlgmr.msra.gmra.mrb[52].mxu1 %vm61_vm0, %v3378_v25  ;;  %2835 = vmatprep.subr.bf16.mxu0 %v3018_v16 }
0x101b   :  { %2843 = vmatprep.mubr.msk.bf16.mxu1 %vm3019_vm1, %v3018_v16 }
0x101d   :  { %2836 = vmatpush3.bf16.msra.mxu0 %v2933_v26 }
0x101e   :  { %2847 = vmatprep.subr.bf16.mxu0 %v3018_v16 }
0x1020   :  { %2838 = vmatmul.mubr.msk.bf16.vlgmr.msra.gmra.mrb[52].mxu0 %vm61_vm0, %v3378_v25 }
0x1021   :  { %2849 = vmatprep.mubr.msk.bf16.mxu0 %vm3019_vm1, %v3018_v16 }
0x10e3   :  { %v3459_v27 = vpop.f32.mrb[44].mxu0 }
0x10e4   :  { %v2809_v28 = vpop.f32.mrb[45].mxu0 }
0x10e5   :  { %v1582_v29 = vpop.f32.mrb[46].mxu0  ;;  %v3461_v30 = vpop.f32.mrb[48].mxu1  ;;  %v2934_v28 = vld [vmem:[%s3581_s7 + $0x10] sm:$0xff]  }
0x10e6   :  { %v1631_v31 = vpack.c.bf16 %v3461_v30, %v3459_v27  ;;  %v2810_v32 = vpop.f32.mrb[47].mxu0  ;;  %v2815_v35 = vpop.f32.mrb[49].mxu1 }
0x10e7   :  { %v1628_v37 = vpop.f32.mrb[50].mxu1 }
0x10e8   :  { %v2816_v39 = vpop.f32.mrb[51].mxu1 }
0x10eb   :  { %v1686_v40 = vpop.f32.mrb[48].mxu0 }
0x10ec   :  { %v2823_v43 = vpop.f32.mrb[49].mxu0  ;;  %v1809_v53 = vpack.c.bf16 %v1686_v40, %v1686_v40 }
0x10ed   :  { %v1689_v44 = vpop.f32.mrb[50].mxu0  ;;  %v1744_v25 = vpop.f32.mrb[52].mxu1 }
0x10ee   :  { %v1811_v45 = vpack.c.bf16 %v1744_v25, %v1744_v25  ;;  %v2824_v46 = vpop.f32.mrb[51].mxu0  ;;  %v2831_v47 = vpop.f32.mrb[53].mxu1  ;;  %v1810_v56 = vpack.c.bf16 %v1689_v44, %v1689_v44 }
0x10ef   :  { %v1747_v48 = vpop.f32.mrb[54].mxu1 }
0x10f0   :  { %v1819_v49 = vsel %vm286_vm2, %v1811_v45, 0  ;;  %v1812_v36 = vpack.c.bf16 %v1747_v48, %v1747_v48  ;;  %v2832_v50 = vpop.f32.mrb[55].mxu1 }
0x10f1   :  { %2842 = vmatpush3.bf16.xpose.msra.mxu1 %v1819_v49 }
0x10f2   :  { %v1865_v51 = vsel %vm286_vm2, %v1812_v36, 0  ;;  %2853 = vmatprep.subr.bf16.mxu1 %v3018_v16 }
0x10f3   :  { %v1802_v52 = vpop.f32.mrb[52].mxu0  ;;  %2848 = vmatpush3.bf16.xpose.msra.mxu0 %v1865_v51 }
0x10f4   :  { %v1813_v38 = vpack.c.bf16 %v1802_v52, %v1802_v52  ;;  %v2839_v41 = vpop.f32.mrb[53].mxu0  ;;  %2859 = vmatprep.subr.bf16.mxu0 %v3018_v16 }
0x10f5   :  { %v1805_v42 = vpop.f32.mrb[54].mxu0 }
0x10f6   :  { %v1814_v54 = vpack.c.bf16 %v1805_v42, %v1805_v42  ;;  %v2840_v55 = vpop.f32.mrb[55].mxu0  ;;  %v1935_v57 = vsel %vm407_vm3, %v1813_v38, 0 }
0x10f8   :  { %2844 = vmatmul.mubr.msk.bf16.vlgmr.msra.gmra.mrb[56].mxu1 %vm286_vm2, %v1809_v53  ;;  %v1981_v58 = vsel %vm407_vm3, %v1814_v54, 0 }
0x10f9   :  { %2854 = vmatpush3.bf16.msra.mxu1 %v1935_v57  ;;  %2855 = vmatprep.mubr.msk.bf16.mxu1 %vm3019_vm1, %v3018_v16 }
0x10fa   :  { %2850 = vmatmul.mubr.msk.bf16.vlgmr.msra.gmra.mrb[56].mxu0 %vm286_vm2, %v1810_v56  ;;  %2865 = vmatprep.subr.bf16.mxu1 %v3018_v16 }
0x10fb   :  { %2860 = vmatpush3.bf16.msra.mxu0 %v1981_v58  ;;  %2861 = vmatprep.mubr.msk.bf16.mxu0 %vm3019_vm1, %v3018_v16 }
0x10fc   :  { %2871 = vmatprep.subr.bf16.mxu0 %v3018_v16 }
0x11cb   :  { %v1855_v59 = vpop.f32.mrb[56].mxu1 }
0x11cc   :  { %v1856_v61 = vadd.f32 %v1855_v59, %v3191_v60  ;;  %v2845_v63 = vpop.f32.mrb[57].mxu1 }
0x11cd   :  { %v1858_v0 = vpop.f32.mrb[58].mxu1  ;;  %v1901_v1 = vpop.f32.mrb[56].mxu0 }
0x11ce   :  { %v1902_v2 = vadd.f32 %v1901_v1, %v3196_v62  ;;  %v2846_v3 = vpop.f32.mrb[59].mxu1  ;;  %v2851_v4 = vpop.f32.mrb[57].mxu0  ;;  %v1907_v5 = vsel %vm379_vm4, %v1856_v61, -inf  ;;  %v2937_v0 = vld [vmem:[%s3584_s10 + $0x18] sm:$0xff]   ;;  %v2938_v1 = vld [vmem:[%s3586_s12 + $0x20] sm:$0xff]  }
0x11cf   :  { %v1904_v6 = vpop.f32.mrb[58].mxu0  ;;  %1908 = vmax.xlane.f32.xlu0 %v1907_v5 }
0x11d0   :  { %v2852_v7 = vpop.f32.mrb[59].mxu0  ;;  %v1910_v8 = vsel %vm379_vm4, %v1902_v2, -inf }
0x11d1   :  { %1911 = vmax.xlane.f32.xlu1 %v1910_v8 }
0x125c   :  { %v1909_v9 = vpop.xlane.xlu0 %1908 }
0x125d   :  { %v1913_v10 = vsub.f32 %v1856_v61, %v1909_v9 }
0x125e   :  { %v1912_v33 = vpop.xlane.xlu1 %1911 }
0x125f   :  { %v1915_v34 = vmul.f32 1.442695, %v1913_v10  ;;  %v1914_v60 = vsub.f32 %v1902_v2, %v1912_v33  ;;  %v2939_v2 = vld [vmem:[%s3586_s12 + $0x28] sm:$0xff]   ;;  %v2519_v10 = vld [vmem:[%s3582_s8 + $0x1] ss:$0 sm:$0xff] }
0x1261   :  { %2978 = vpow2.f32 %v1915_v34  ;;  %v1917_v11 = vmul.f32 1.442695, %v1914_v60 }
0x1263   :  { %2980 = vpow2.f32 %v1917_v11 }
0x126b   :  { %v2979_v12 = vpop.eup %2978 }
0x126c   :  { %v1919_v62 = vsel %vm379_vm4, %v2979_v12, 0.0 }
0x126d   :  { %v2981_v13 = vpop.eup %2980  ;;  %1920 = vadd.xlane.f32.xlu0 %v1919_v62 }
0x126e   :  { %v1922_v14 = vsel %vm379_vm4, %v2981_v13, 0.0 }
0x126f   :  { %1923 = vadd.xlane.f32.xlu1 %v1922_v14 }
0x12fa   :  { %v1921_v15 = vpop.xlane.xlu0 %1920 }
0x12fb   :  { %2982 = vrcp.f32 %v1921_v15 }
0x12fc   :  { %v1924_v17 = vpop.xlane.xlu1 %1923 }
0x12fd   :  { %2984 = vrcp.f32 %v1924_v17  ;;  %v2940_v17 = vld [vmem:[%s3586_s12 + $0x30] sm:$0xff]  }
0x1305   :  { %v2983_v18 = vpop.eup %2982 }
0x1306   :  { %v1927_v19 = vmul.f32 %v2983_v18, %v2979_v12  ;;  %v2520_v12 = vld [vmem:[%s3583_s9 + $0x1] ss:$0 sm:$0xff]  ;;  %v2941_v18 = vld [vmem:[%s3586_s12 + $0x38] sm:$0xff]  }
0x1307   :  { %v2985_v20 = vpop.eup %2984 }
0x1308   :  { %v1928_v24 = vmul.f32 %v2985_v20, %v2981_v13  ;;  %v1929_v26 = vpack.c.bf16 %v1927_v19, %v1927_v19  ;;  %v2526_v19 = vld [vmem:[%s3585_s11 + $0x1] ss:$0 sm:$0xff] }
0x130a   :  { %2856 = vmatmul.mubr.msk.bf16.vlgmr.msra.gmra.mrb[60].mxu1 %vm379_vm4, %v1929_v26  ;;  %v1930_v29 = vpack.c.bf16 %v1928_v24, %v1928_v24 }
0x130b   :  { %2866 = vmatpush3.bf16.msra.mxu1 %v2935_v21  ;;  %2867 = vmatprep.mubr.msk.bf16.mxu1 %vm3019_vm1, %v3018_v16 }
0x130c   :  { %2862 = vmatmul.mubr.msk.bf16.vlgmr.msra.gmra.mrb[60].mxu0 %vm379_vm4, %v1930_v29  ;;  %2877 = vmatprep.subr.bf16.mxu1 %v3018_v16 }
0x130d   :  { %2872 = vmatpush3.bf16.msra.mxu0 %v2934_v28  ;;  %2873 = vmatprep.mubr.msk.bf16.mxu0 %vm3019_vm1, %v3018_v16 }
0x130e   :  { %2885 = vmatprep.subr.bf16.mxu0 %v3018_v16 }
0x1314   :  { %2874 = vmatmul.mubr.msk.bf16.vlgmr.msra.gmra.mrb[64].mxu0 %vm286_vm2, %v1631_v31 }
0x1315   :  { %2893 = vmatprep.mubr.msk.bf16.mxu0 %vm3019_vm1, %v3018_v16  ;;  %2886 = vmatpush3.bf16.msra.mxu0 %v2938_v1 }
0x1316   :  { %2887 = vmatprep.subr.bf16.mxu0 %v3018_v16 }
0x1319   :  { %2888 = vmatpush3.bf16.msra.mxu0 %v2939_v2 }
0x131a   :  { %2889 = vmatprep.subr.bf16.mxu0 %v3018_v16 }
0x131d   :  { %2890 = vmatpush3.bf16.msra.mxu0 %v2940_v17 }
0x131e   :  { %2891 = vmatprep.subr.bf16.mxu0 %v3018_v16 }
0x1321   :  { %2892 = vmatpush3.bf16.msra.mxu0 %v2941_v18 }
0x13dd   :  { %v1971_v32 = vpop.f32.mrb[60].mxu1 }
0x13de   :  { %v2857_v35 = vpop.f32.mrb[61].mxu1 }
0x13df   :  { %v1974_v37 = vpop.f32.mrb[62].mxu1  ;;  %v2017_v39 = vpop.f32.mrb[60].mxu0 }
0x13e0   :  { %v2023_v40 = vpack.c.bf16 %v2017_v39, %v1971_v32  ;;  %v2858_v43 = vpop.f32.mrb[63].mxu1  ;;  %v2863_v44 = vpop.f32.mrb[61].mxu0 }
0x13e1   :  { %v2020_v25 = vpop.f32.mrb[62].mxu0 }
0x13e2   :  { %v2864_v45 = vpop.f32.mrb[63].mxu0  ;;  %2868 = vmatmul.mubr.msk.bf16.vlgmr.msra.gmra.mrb[64].mxu1 %vm286_vm2, %v2023_v40 }
0x13e3   :  { %2881 = vmatprep.mubr.msk.bf16.mxu1 %vm3019_vm1, %v3018_v16 }
0x13e7   :  { %v2120_v27 = vpop.f32.mrb[64].mxu0 }
0x13e8   :  { %v2875_v30 = vpop.f32.mrb[65].mxu0 }
0x13e9   :  { %v2123_v31 = vpop.f32.mrb[66].mxu0 }
0x13ea   :  { %v2876_v46 = vpop.f32.mrb[67].mxu0 }
0x14b5   :  { %v2070_v47 = vpop.f32.mrb[64].mxu1 }
0x14b6   :  { %v2121_v48 = vadd.f32 %v2120_v27, %v2070_v47  ;;  %v2869_v49 = vpop.f32.mrb[65].mxu1 }
0x14b7   :  { %v2073_v36 = vpop.f32.mrb[66].mxu1 }
0x14b8   :  { %v2124_v50 = vadd.f32 %v2123_v31, %v2073_v36  ;;  %v2870_v51 = vpop.f32.mrb[67].mxu1  ;;  %v2127_v52 = vadd.f32 %v2121_v48, %v3369_v22 }
0x14ba   :  { %v2133_v38 = vsel %vm61_vm0, %v2127_v52, 0.0  ;;  %v2128_v41 = vadd.f32 %v2124_v50, %v3371_v23  ;;  %v2936_v23 = vld [vmem:[%s3584_s10 + $0x10] sm:$0xff]  }
0x14bb   :  { %2134 = vadd.xlane.f32.xlu0 %v2133_v38  ;;  %2878 = vmatpush3.bf16.msra.mxu1 %v2936_v23  ;;  %v2548_v23 = vld [vmem:[%s3589_s15 + $0x1] ss:$0 sm:$0xff] }
0x14bc   :  { %v2136_v42 = vsel %vm61_vm0, %v2128_v41, 0.0  ;;  %2879 = vmatprep.subr.bf16.mxu1 %v3018_v16  ;;  %v2539_v16 = vld [vmem:[%s3587_s13 + $0x1] ss:$0 sm:$0xff] }
0x14bd   :  { %2137 = vadd.xlane.f32.xlu1 %v2136_v42 }
0x14bf   :  { %2880 = vmatpush3.bf16.msra.mxu1 %v2937_v0 }
0x1548   :  { %v2135_v53 = vpop.xlane.xlu0 %2134 }
0x1549   :  { %v2139_v54 = vmul.f32 0.03125, %v2135_v53 }
0x154a   :  { %v2138_v55 = vpop.xlane.xlu1 %2137 }
0x154b   :  { %v2141_v56 = vsub.f32 %v2127_v52, %v2139_v54  ;;  %v2140_v57 = vmul.f32 0.03125, %v2138_v55 }
0x154d   :  { %v2142_v58 = vsub.f32 %v2128_v41, %v2140_v57  ;;  %v2143_v59 = vmul.f32 %v2141_v56, %v2141_v56 }
0x154f   :  { %v2145_v61 = vsel %vm61_vm0, %v2143_v59, 0.0  ;;  %v2144_v63 = vmul.f32 %v2142_v58, %v2142_v58 }
0x1550   :  { %2146 = vadd.xlane.f32.xlu0 %v2145_v61  ;;  %v2547_v61 = vld [vmem:[%s3588_s14 + $0x1] ss:$0 sm:$0xff] }
0x1551   :  { %v2148_v22 = vsel %vm61_vm0, %v2144_v63, 0.0 }
0x1552   :  { %2149 = vadd.xlane.f32.xlu1 %v2148_v22 }
0x15dd   :  { %v2147_v3 = vpop.xlane.xlu0 %2146 }
0x15de   :  { %v2151_v4 = vmul.f32 0.03125, %v2147_v3 }
0x15df   :  { %v2150_v5 = vpop.xlane.xlu1 %2149 }
0x15e0   :  { %v2153_v6 = vadd.f32 1e-06, %v2151_v4  ;;  %v2152_v7 = vmul.f32 0.03125, %v2150_v5 }
0x15e2   :  { %2986 = vrsqrt.f32 %v2153_v6  ;;  %v2154_v8 = vadd.f32 1e-06, %v2152_v7 }
0x15e4   :  { %2988 = vrsqrt.f32 %v2154_v8 }
0x15ec   :  { %v2987_v9 = vpop.eup %2986 }
0x15ed   :  { %v2157_v33 = vmul.f32 %v2987_v9, %v2141_v56 }
0x15ee   :  { %v2989_v34 = vpop.eup %2988 }
0x15ef   :  { %v2165_v60 = vmul.f32 %v2519_v10, %v2157_v33  ;;  %v2158_v11 = vmul.f32 %v2989_v34, %v2142_v58 }
0x15f1   :  { %v2166_v62 = vmul.f32 %v2519_v10, %v2158_v11  ;;  %v2173_v13 = vadd.f32 %v2520_v12, %v2165_v60 }
0x15f3   :  { %v2174_v14 = vadd.f32 %v2520_v12, %v2166_v62 }
0x15f5   :  { %v2175_v15 = vpack.c.bf16 %v2174_v14, %v2173_v13 }
0x15f7   :  { %2882 = vmatmul.mubr.msk.bf16.vlgmr.msra.gmra.mrb[68].mxu1 %vm61_vm0, %v2175_v15 }
0x16ca   :  { %v2238_v20 = vpop.f32.mrb[68].mxu1 }
0x16cb   :  { %v2239_v21 = vadd.f32 %v2526_v19, %v2238_v20  ;;  %v2883_v24 = vpop.f32.mrb[69].mxu1 }
0x16cc   :  { %v2241_v26 = vpop.f32.mrb[70].mxu1 }
0x16cd   :  { %v2242_v28 = vadd.f32 %v2526_v19, %v2241_v26  ;;  %v2884_v29 = vpop.f32.mrb[71].mxu1  ;;  %v2245_v32 = vmax.f32 %v2239_v21, 0.0 }
0x16cf   :  { %v2246_v35 = vmax.f32 %v2242_v28, 0.0 }
0x16d1   :  { %v2247_v37 = vpack.c.bf16 %v2246_v35, %v2245_v32 }
0x16d3   :  { %2894 = vmatmul.mubr.msk.bf16.vlgmr.msra.gmra.mrb[68].mxu0 %vm1148_vm5, %v2247_v37 }
0x17a6   :  { %v2326_v39 = vpop.f32.mrb[68].mxu0 }
0x17a7   :  { %v2327_v40 = vadd.f32 %v2539_v16, %v2326_v39  ;;  %v2895_v43 = vpop.f32.mrb[69].mxu0 }
0x17a8   :  { %v2329_v44 = vpop.f32.mrb[70].mxu0 }
0x17a9   :  { %v2330_v25 = vadd.f32 %v2539_v16, %v2329_v44  ;;  %v2896_v45 = vpop.f32.mrb[71].mxu0  ;;  %v2333_v27 = vadd.f32 %v2327_v40, %v2173_v13 }
0x17ab   :  { %v2339_v30 = vsel %vm61_vm0, %v2333_v27, 0.0  ;;  %v2334_v31 = vadd.f32 %v2330_v25, %v2174_v14 }
0x17ac   :  { %2340 = vadd.xlane.f32.xlu0 %v2339_v30 }
0x17ad   :  { %v2342_v46 = vsel %vm61_vm0, %v2334_v31, 0.0 }
0x17ae   :  { %2343 = vadd.xlane.f32.xlu1 %v2342_v46 }
0x1839   :  { %v2341_v47 = vpop.xlane.xlu0 %2340 }
0x183a   :  { %v2345_v48 = vmul.f32 0.03125, %v2341_v47 }
0x183b   :  { %v2344_v49 = vpop.xlane.xlu1 %2343 }
0x183c   :  { %v2347_v36 = vsub.f32 %v2333_v27, %v2345_v48  ;;  %v2346_v50 = vmul.f32 0.03125, %v2344_v49 }
0x183e   :  { %v2348_v51 = vsub.f32 %v2334_v31, %v2346_v50  ;;  %v2349_v52 = vmul.f32 %v2347_v36, %v2347_v36 }
0x1840   :  { %v2351_v38 = vsel %vm61_vm0, %v2349_v52, 0.0  ;;  %v2350_v41 = vmul.f32 %v2348_v51, %v2348_v51 }
0x1841   :  { %2352 = vadd.xlane.f32.xlu0 %v2351_v38 }
0x1842   :  { %v2354_v42 = vsel %vm61_vm0, %v2350_v41, 0.0 }
0x1843   :  { %2355 = vadd.xlane.f32.xlu1 %v2354_v42 }
0x18ce   :  { %v2353_v53 = vpop.xlane.xlu0 %2352 }
0x18cf   :  { %v2357_v54 = vmul.f32 0.03125, %v2353_v53 }
0x18d0   :  { %v2356_v55 = vpop.xlane.xlu1 %2355 }
0x18d1   :  { %v2359_v56 = vadd.f32 1e-06, %v2357_v54  ;;  %v2358_v57 = vmul.f32 0.03125, %v2356_v55 }
0x18d3   :  { %2990 = vrsqrt.f32 %v2359_v56  ;;  %v2360_v58 = vadd.f32 1e-06, %v2358_v57 }
0x18d5   :  { %2992 = vrsqrt.f32 %v2360_v58 }
0x18dd   :  { %v2991_v59 = vpop.eup %2990 }
0x18de   :  { %v2363_v63 = vmul.f32 %v2991_v59, %v2347_v36 }
0x18df   :  { %v2993_v22 = vpop.eup %2992 }
0x18e0   :  { %v2364_v0 = vmul.f32 %v2993_v22, %v2348_v51  ;;  %v2371_v1 = vmul.f32 %v2547_v61, %v2363_v63 }
0x18e2   :  { %v2372_v2 = vmul.f32 %v2547_v61, %v2364_v0  ;;  %v2379_v3 = vadd.f32 %v2548_v23, %v2371_v1 }
0x18e4   :  { %v2380_v4 = vadd.f32 %v2548_v23, %v2372_v2  ;;  %2381 = vst.msk [vmem:[#allocation2] sm:$0xff] %vm61_vm0, %v2379_v3 }
0x18e6   :  { %2382 = vst.msk [vmem:[#allocation2 + $0x8] sm:$0xff] %vm61_vm0, %v2380_v4 }
0x18e7   :  { %3005 = shalt.err (!%p3002_p4)
}
0x18e8   :  { %s3006_s23 = scalar_lea.hbm %s3590_s16, 256 }
0x18e9   :  { %p3007_p5 = scmp.ne.s32.totalorder %s3590_s16, %s3006_s23  ;;  %p3010_p6 = scmp.lt.u32.totalorder %s3006_s23, %s3590_s16 }
0x18eb   :  { %p3012_p7 = pnand %p3010_p6, %p3007_p5 }
0x18ed   :  { %3015 = shalt.err (!%p3012_p7)
}
0x18ee   :  { %s3021_s25 = smov 128   ;;  %s3022_s26 = smov 8  }
0x18ef   :  { %2394 = dma.vmem_to_hbm [thread:$0]  %s2389_s21, 256, %s3590_s16, [#allocation3], %s3021_s25, %s3021_s25, %s3022_s26  }
0x18f0   :  { %3016 = dma.done.wait [#allocation3], 256  }
0x18f1   :  { %3017 = vsyncadd [#allocation3], 4294967040 }
0x18f2   :  { %2398 = vsyncpa [#allocation3], 1 }

</bundles_post_ra>
